<compile_context>
chip_gen: v7x
topology: tpu7x:2x2x1
jax: 0.10.0
libtpu: 0.0.40
codegen_flags: <defaults>
</compile_context>

<pallas_src>
import functools
import math

import jax
import jax.numpy as jnp
from jax import lax
from jax.experimental import pallas as pl
from jax.experimental.pallas import tpu as pltpu


def sinusoid_position_encoding(sequence_length, hidden_size,
                               min_timescale=2.0, max_timescale=10000.0):
    freqs = jnp.arange(0, hidden_size, min_timescale, dtype=jnp.float32)
    inv_freq = max_timescale ** (-freqs / hidden_size)
    pos_seq = jnp.arange(sequence_length - 1, -1, -1.0, dtype=jnp.float32)
    sinusoid_inp = pos_seq[:, None] * inv_freq[None, :]
    return jnp.concatenate([jnp.sin(sinusoid_inp), jnp.cos(sinusoid_inp)], axis=-1)


def _hma_kernel(q_ref, kmem_ref, cont_ref, mask_ref,
                wqo_ref, wko_ref, wqom_ref, bqm_ref,
                wkv_ref, kvb_ref, hs_ref, hst_ref, seg_ref, cs_ref,
                wom_ref, bom_ref,
                out_ref, *, k, num_heads):
    # Ref shapes (per grid step / batch element b):
    #   q_ref    (1, T, D)      kmem_ref (1, M, D)     cont_ref (1, M, C*D)
    #   mask_ref (1, T, M)
    #   wqo/wko/wqom/wom (D, D) bqm/bom (1, D)
    #   wkv_ref  (C*D, 2*C*D)   kvb_ref  (1, 2*C*D)
    #   hs_ref   (C*D, H*C)     hst_ref  (H*C, C*D)
    #   seg_ref  (H*C, H*C)     cs_ref   (C*D, D)
    #   out_ref  (1, T, D)
    T, D = q_ref.shape[1], q_ref.shape[2]
    M = kmem_ref.shape[1]
    CD = cont_ref.shape[2]
    C = CD // D
    f32 = jnp.float32

    queries = q_ref[0]          # (T, D)
    mem_keys = kmem_ref[0]      # (M, D)
    mask = mask_ref[0]          # (T, M)  float (1.0 == keep)
    cont_flat = cont_ref[0]     # (M, C*D)

    # Outer projections (query_proj / key_proj, no bias) and the fused
    # inner-attention query projection.  1/sqrt(D) is folded into wqo and
    # 1/sqrt(head_dim) into wqom/bqm (done in the wrapper).
    qh = jnp.dot(queries, wqo_ref[...], preferred_element_type=f32)    # (T, D)
    kh = jnp.dot(mem_keys, wko_ref[...], preferred_element_type=f32)   # (M, D)
    q_mha = jnp.dot(queries, wqom_ref[...],
                    preferred_element_type=f32) + bqm_ref[...]         # (T, D)

    logits = jnp.dot(qh, kh.T, preferred_element_type=f32)             # (T, M)
    logits = jnp.where(mask > 0.5, logits, jnp.float32(-1e9))

    # --- iterative top-k over the memory axis (k is small & static) -----
    iota = lax.broadcasted_iota(jnp.int32, (T, M), 1)
    onehots, topvals = [], []
    cur = logits
    for _ in range(k):
        mx = jnp.max(cur, axis=-1, keepdims=True)                       # (T, 1)
        first = jnp.min(jnp.where(cur == mx, iota, M), axis=-1, keepdims=True)
        oh = (iota == first).astype(f32)                                # (T, M)
        onehots.append(oh)
        topvals.append(mx)
        cur = jnp.where(oh > 0.5, jnp.float32(-jnp.inf), cur)

    oh_all = jnp.concatenate(onehots, axis=0)                           # (k*T, M)
    topk = jnp.concatenate(topvals, axis=-1)                            # (T, k)
    tmax = jnp.max(topk, axis=-1, keepdims=True)
    texp = jnp.exp(topk - tmax)
    # Exact reciprocal here (tiny tensor) so the weights sum to 1 and the
    # output bias can be folded out of the k-way sum.
    weights = texp / jnp.sum(texp, axis=-1, keepdims=True)              # (T, k)

    # Per-chunk K/V projection of the WHOLE memory, once per batch
    # (linearity hoist): ckv[m, c*D:(c+1)*D] = contents[m,c] @ wkm, V part after.
    ckv = jnp.dot(cont_flat, wkv_ref[...], preferred_element_type=f32)  # (M, 2CD)
    # One fused gather matmul for all k selections of all queries; the
    # positional encoding and K/V biases are folded into kvb (precomputed).
    kv = jnp.dot(oh_all, ckv, preferred_element_type=f32) + kvb_ref[...]  # (kT, 2CD)
    k_all = kv[:, :CD]            # clean 128-aligned lane slice
    v_all = kv[:, CD:]

    # Broadcast q_mha to the (kT, C*D) layout of K/V (pure concats, no reshape).
    q_rep = jnp.concatenate([q_mha] * C, axis=1)                         # (T, CD)
    q_big = jnp.concatenate([q_rep] * k, axis=0)                         # (kT, CD)

    # Per-head / per-chunk scores via one VPU product + one selector matmul.
    scores = jnp.dot(q_big * k_all, hs_ref[...],
                     preferred_element_type=f32)                         # (kT, H*C)

    # Segmented (per-head) softmax over the chunk axis: one exp + one 0/1
    # block matmul for the per-head denominators.  The global row max is a
    # valid upper bound for every head segment (exp args <= 0 -> stable).
    smax = jnp.max(scores, axis=-1, keepdims=True)
    e = jnp.exp(scores - smax)
    denom = jnp.dot(e, seg_ref[...], preferred_element_type=f32)         # (kT, H*C)
    attn = e * pl.reciprocal(denom, approx=True)

    # Scatter attention back onto the (kT, C*D) lane layout, weight V and
    # sum over chunks with a tiled-identity selector matmul.
    attn_full = jnp.dot(attn, hst_ref[...], preferred_element_type=f32)  # (kT, CD)
    ctx = jnp.dot(attn_full * v_all, cs_ref[...],
                  preferred_element_type=f32)                            # (kT, D)

    # Weighted combination over the k selections BEFORE the output
    # projection (weights sum to 1, so out = (sum_j w_j ctx_j) @ wom + bom).
    acc = jnp.zeros((T, D), f32)
    for j in range(k):
        acc = acc + weights[:, j:j + 1] * ctx[j * T:(j + 1) * T, :]
    out = jnp.dot(acc, wom_ref[...], preferred_element_type=f32) + bom_ref[...]
    out_ref[0] = out.astype(out_ref.dtype)


def hierarchical_memory_attention(queries, mem_keys, mem_contents, mask, params,
                                  *, k, num_heads):
    B, T, D = queries.shape
    _, M, C, _ = mem_contents.shape
    hd = D // num_heads
    hp = lax.Precision.HIGHEST
    f32 = jnp.float32

    # Free row-major reshape (no transpose / extra HBM pass).
    cont_flat = mem_contents.reshape(B, M, C * D)
    mask_f = mask.astype(f32)
    pos = sinusoid_position_encoding(C, D)                    # (C, D)

    wqo, wko = params['wqo'], params['wko']
    wqm, bqm = params['wqm'], params['bqm']
    wkm, bkm = params['wkm'], params['bkm']
    wvm, bvm = params['wvm'], params['bvm']
    wom, bom = params['wom'], params['bom']

    # Fold the two attention scales into the query-side weights (fewer VPU
    # passes in the kernel) and fuse the inner query projection:
    #   logits scale 1/sqrt(D)      -> wqo
    #   score  scale 1/sqrt(hd)     -> wqom = wqo @ wqm, and bqm
    wqo_s = wqo * (1.0 / math.sqrt(D))
    wqom_s = jnp.dot(wqo, wqm, precision=hp) * (1.0 / math.sqrt(hd))
    bqm_s = bqm * (1.0 / math.sqrt(hd))

    # Block-diagonal per-chunk K|V projection (fused along lanes).
    eye_c = jnp.eye(C, dtype=f32)
    w_kv_big = jnp.concatenate(
        [jnp.kron(eye_c, wkm), jnp.kron(eye_c, wvm)], axis=1)  # (C*D, 2*C*D)
    # Position encoding + biases folded through the (linear) K/V projection.
    pk = jnp.dot(pos, wkm, precision=hp) + bkm                 # (C, D)
    pv = jnp.dot(pos, wvm, precision=hp) + bvm
    kv_bias = jnp.concatenate(
        [pk.reshape(1, C * D), pv.reshape(1, C * D)], axis=1)  # (1, 2*C*D)

    # Head/chunk selector matrices (0/1), keep score / softmax-denominator /
    # context math on the MXU instead of per-head lane slices + XLU reductions.
    lane = jnp.arange(C * D)
    col = ((lane % D) // hd) * C + (lane // D)
    hs = jax.nn.one_hot(col, num_heads * C, dtype=f32)         # (C*D, H*C)
    hs_t = hs.T                                                # (H*C, C*D)
    seg = jnp.kron(jnp.eye(num_heads, dtype=f32),
                   jnp.ones((C, C), dtype=f32))                # (H*C, H*C)
    cs = jnp.tile(jnp.eye(D, dtype=f32), (C, 1))               # (C*D, D)

    def bspec(shape):
        n = len(shape)
        return pl.BlockSpec((1,) + tuple(shape[1:]),
                            lambda b, n=n: (b,) + (0,) * (n - 1))

    def pspec(shape):
        n = len(shape)
        return pl.BlockSpec(tuple(shape), lambda b, n=n: (0,) * n)

    kernel = functools.partial(_hma_kernel, k=k, num_heads=num_heads)
    grid_spec = pltpu.PrefetchScalarGridSpec(
        num_scalar_prefetch=0,
        grid=(B,),
        in_specs=[
            bspec(queries.shape),
            bspec(mem_keys.shape),
            bspec(cont_flat.shape),
            bspec(mask_f.shape),
            pspec(wqo_s.shape), pspec(wko.shape), pspec(wqom_s.shape), pspec(bqm_s.shape),
            pspec(w_kv_big.shape), pspec(kv_bias.shape),
            pspec(hs.shape), pspec(hs_t.shape), pspec(seg.shape), pspec(cs.shape),
            pspec(wom.shape), pspec(bom.shape),
        ],
        out_specs=pl.BlockSpec((1, T, D), lambda b: (b, 0, 0)),
    )
    # TODO(synk): for large T / M, add a second grid axis tiling T (and bound
    # the resident contents block) so the per-step VMEM fits v7x's 64 MiB.
    return pl.pallas_call(
        kernel,
        out_shape=jax.ShapeDtypeStruct((B, T, D), jnp.float32),
        grid_spec=grid_spec,
        compiler_params=pltpu.CompilerParams(dimension_semantics=("parallel",)),
    )(queries, mem_keys, cont_flat, mask_f,
      wqo_s, wko, wqom_s, bqm_s, w_kv_big, kv_bias, hs, hs_t, seg, cs, wom, bom)


def init_params(rng, D, init_scale=2.0):
    ks = jax.random.split(rng, 10)

    def xavier(key, gain):
        limit = gain * math.sqrt(6.0 / (D + D))
        return jax.random.uniform(key, (D, D), jnp.float32, -limit, limit)

    # nn.Linear / MHA in_proj compute y = x @ W.T, so store W.T for
    # right-multiplication inside the kernel.
    return dict(
        wqo=xavier(ks[0], init_scale).T,
        wko=xavier(ks[1], init_scale).T,
        wqm=xavier(ks[2], 1.0).T,
        wkm=xavier(ks[3], 1.0).T,
        wvm=xavier(ks[4], 1.0).T,
        wom=xavier(ks[5], 1.0).T,
        bqm=0.02 * jax.random.normal(ks[6], (1, D), jnp.float32),
        bkm=0.02 * jax.random.normal(ks[7], (1, D), jnp.float32),
        bvm=0.02 * jax.random.normal(ks[8], (1, D), jnp.float32),
        bom=0.02 * jax.random.normal(ks[9], (1, D), jnp.float32),
    )


def reference_forward(queries, mem_keys, mem_contents, mask, params, *, k, num_heads):
    """Pure-JAX reference mirroring the PyTorch forward (for validation)."""
    B, T, D = queries.shape
    _, M, C, _ = mem_contents.shape
    hd = D // num_heads
    hp = lax.Precision.HIGHEST
    qh = jnp.einsum('btd,de->bte', queries, params['wqo'], precision=hp)
    kh = jnp.einsum('bmd,de->bme', mem_keys, params['wko'], precision=hp)
    logits = jnp.einsum('btd,bmd->btm', qh, kh, precision=hp) / math.sqrt(D)
    logits = jnp.where(mask, logits, -1e9)
    topv, topi = lax.top_k(logits, k)
    w = jax.nn.softmax(topv, axis=-1)
    oh = jax.nn.one_hot(topi, M, dtype=jnp.float32)                       # (B,T,k,M)
    gathered = jnp.einsum('btjm,bmcd->btjcd', oh, mem_contents, precision=hp)
    gathered = gathered + sinusoid_position_encoding(C, D)
    q_mha = jnp.einsum('btd,de->bte', qh, params['wqm'], precision=hp) + params['bqm'][0]
    k_in = jnp.einsum('btjcd,de->btjce', gathered, params['wkm'], precision=hp) + params['bkm'][0]
    v_in = jnp.einsum('btjcd,de->btjce', gathered, params['wvm'], precision=hp) + params['bvm'][0]
    qheads = q_mha.reshape(B, T, num_heads, hd)
    kheads = k_in.reshape(B, T, k, C, num_heads, hd)
    vheads = v_in.reshape(B, T, k, C, num_heads, hd)
    scores = jnp.einsum('bthd,btjchd->btjhc', qheads, kheads, precision=hp) / math.sqrt(hd)
    attn = jax.nn.softmax(scores, axis=-1)
    ctx = jnp.einsum('btjhc,btjchd->btjhd', attn, vheads, precision=hp).reshape(B, T, k, D)
    out_j = jnp.einsum('btjd,de->btje', ctx, params['wom'], precision=hp) + params['bom'][0]
    return jnp.sum(w[..., None] * out_j, axis=2)


if __name__ == "__main__":
    # Small shapes: B=2 batch, T=8 query length, M=16 memories,
    # C=8 chunk size, D=32 feature size, k=4 memories selected, 2 heads.
    B, T, M, C, D = 2, 8, 16, 8, 32
    K, H = 4, 2

    root = jax.random.PRNGKey(0)
    k1, k2, k3, k4, k5 = jax.random.split(root, 5)
    queries = jax.random.normal(k1, (B, T, D), jnp.float32)
    mem_keys = jax.random.normal(k2, (B, M, D), jnp.float32)
    mem_contents = jax.random.normal(k3, (B, M, C, D), jnp.float32)
    hm_mask = jax.random.bernoulli(k4, 0.8, (B, T, M))
    params = init_params(k5, D)

    out = hierarchical_memory_attention(queries, mem_keys, mem_contents, hm_mask,
                                        params, k=K, num_heads=H)
    out = jax.block_until_ready(out)

    ref = reference_forward(queries, mem_keys, mem_contents, hm_mask, params,
                            k=K, num_heads=H)
    assert out.shape == (B, T, D)
    # Slightly looser tolerance than pure-f32: approx (EUP) reciprocals are
    # used for the inner-attention softmax denominators.
    assert bool(jnp.allclose(out, ref, atol=5e-3, rtol=5e-3)), \
        float(jnp.max(jnp.abs(out - ref)))
    print("KERNEL_OK")
</pallas_src>

<mosaic_0001>
module attributes {stable_mosaic.version = 11 : i64} {
  func.func @_hma_kernel(%arg0: i32, %arg1: memref<1x8x32xf32, #tpu.memory_space<vmem>>, %arg2: memref<1x16x32xf32, #tpu.memory_space<vmem>>, %arg3: memref<1x16x256xf32, #tpu.memory_space<vmem>>, %arg4: memref<1x8x16xf32, #tpu.memory_space<vmem>>, %arg5: memref<32x32xf32, #tpu.memory_space<vmem>>, %arg6: memref<32x32xf32, #tpu.memory_space<vmem>>, %arg7: memref<32x32xf32, #tpu.memory_space<vmem>>, %arg8: memref<1x32xf32, #tpu.memory_space<vmem>>, %arg9: memref<256x512xf32, #tpu.memory_space<vmem>>, %arg10: memref<1x512xf32, #tpu.memory_space<vmem>>, %arg11: memref<256x16xf32, #tpu.memory_space<vmem>>, %arg12: memref<16x256xf32, #tpu.memory_space<vmem>>, %arg13: memref<16x16xf32, #tpu.memory_space<vmem>>, %arg14: memref<256x32xf32, #tpu.memory_space<vmem>>, %arg15: memref<32x32xf32, #tpu.memory_space<vmem>>, %arg16: memref<1x32xf32, #tpu.memory_space<vmem>>, %arg17: memref<1x8x32xf32, #tpu.memory_space<vmem>>) attributes {dimension_semantics = [#tpu.dimension_semantics<parallel>], iteration_bounds = array<i64: 2>, scalar_prefetch = 0 : i64, scratch_operands = 0 : i64, tpu.core_type = #tpu.core_type<tc>, window_params = [{transform_indices = @transform_0, window_bounds = array<i64: 1, 8, 32>}, {transform_indices = @transform_1, window_bounds = array<i64: 1, 16, 32>}, {transform_indices = @transform_2, window_bounds = array<i64: 1, 16, 256>}, {transform_indices = @transform_3, window_bounds = array<i64: 1, 8, 16>}, {pipeline_mode = #tpu.pipeline_mode<synchronous>, transform_indices = @transform_4, window_bounds = array<i64: 32, 32>}, {pipeline_mode = #tpu.pipeline_mode<synchronous>, transform_indices = @transform_5, window_bounds = array<i64: 32, 32>}, {pipeline_mode = #tpu.pipeline_mode<synchronous>, transform_indices = @transform_6, window_bounds = array<i64: 32, 32>}, {pipeline_mode = #tpu.pipeline_mode<synchronous>, transform_indices = @transform_7, window_bounds = array<i64: 1, 32>}, {pipeline_mode = #tpu.pipeline_mode<synchronous>, transform_indices = @transform_8, window_bounds = array<i64: 256, 512>}, {pipeline_mode = #tpu.pipeline_mode<synchronous>, transform_indices = @transform_9, window_bounds = array<i64: 1, 512>}, {pipeline_mode = #tpu.pipeline_mode<synchronous>, transform_indices = @transform_10, window_bounds = array<i64: 256, 16>}, {pipeline_mode = #tpu.pipeline_mode<synchronous>, transform_indices = @transform_11, window_bounds = array<i64: 16, 256>}, {pipeline_mode = #tpu.pipeline_mode<synchronous>, transform_indices = @transform_12, window_bounds = array<i64: 16, 16>}, {pipeline_mode = #tpu.pipeline_mode<synchronous>, transform_indices = @transform_13, window_bounds = array<i64: 256, 32>}, {pipeline_mode = #tpu.pipeline_mode<synchronous>, transform_indices = @transform_14, window_bounds = array<i64: 32, 32>}, {pipeline_mode = #tpu.pipeline_mode<synchronous>, transform_indices = @transform_15, window_bounds = array<i64: 1, 32>}, {transform_indices = @transform_16, window_bounds = array<i64: 1, 8, 32>}]} {
    %c0 = arith.constant 0 : index
    %c0_0 = arith.constant 0 : index
    %c0_1 = arith.constant 0 : index
    %0 = vector.load %arg1[%c0, %c0_0, %c0_1] : memref<1x8x32xf32, #tpu.memory_space<vmem>>, vector<1x8x32xf32>
    %1 = vector.shape_cast %0 : vector<1x8x32xf32> to vector<8x32xf32>
    %c0_2 = arith.constant 0 : index
    %c0_3 = arith.constant 0 : index
    %c0_4 = arith.constant 0 : index
    %2 = vector.load %arg2[%c0_2, %c0_3, %c0_4] : memref<1x16x32xf32, #tpu.memory_space<vmem>>, vector<1x16x32xf32>
    %3 = vector.shape_cast %2 : vector<1x16x32xf32> to vector<16x32xf32>
    %c0_5 = arith.constant 0 : index
    %c0_6 = arith.constant 0 : index
    %c0_7 = arith.constant 0 : index
    %4 = vector.load %arg4[%c0_5, %c0_6, %c0_7] : memref<1x8x16xf32, #tpu.memory_space<vmem>>, vector<1x8x16xf32>
    %5 = vector.shape_cast %4 : vector<1x8x16xf32> to vector<8x16xf32>
    %c0_8 = arith.constant 0 : index
    %c0_9 = arith.constant 0 : index
    %c0_10 = arith.constant 0 : index
    %6 = vector.load %arg3[%c0_8, %c0_9, %c0_10] : memref<1x16x256xf32, #tpu.memory_space<vmem>>, vector<1x16x256xf32>
    %7 = vector.shape_cast %6 : vector<1x16x256xf32> to vector<16x256xf32>
    %c0_11 = arith.constant 0 : index
    %c0_12 = arith.constant 0 : index
    %8 = vector.load %arg5[%c0_11, %c0_12] : memref<32x32xf32, #tpu.memory_space<vmem>>, vector<32x32xf32>
    %cst = arith.constant dense<0.000000e+00> : vector<8x32xf32>
    %9 = tpu.matmul %1, %8, %cst {dimension_numbers = #tpu.dot_dimension_numbers<[1], [0], [0], [1], [0, 0, 1, 1], [], []>} : vector<8x32xf32>, vector<32x32xf32>, vector<8x32xf32> -> vector<8x32xf32>
    %c0_13 = arith.constant 0 : index
    %c0_14 = arith.constant 0 : index
    %10 = vector.load %arg6[%c0_13, %c0_14] : memref<32x32xf32, #tpu.memory_space<vmem>>, vector<32x32xf32>
    %cst_15 = arith.constant dense<0.000000e+00> : vector<16x32xf32>
    %11 = tpu.matmul %3, %10, %cst_15 {dimension_numbers = #tpu.dot_dimension_numbers<[1], [0], [0], [1], [0, 0, 1, 1], [], []>} : vector<16x32xf32>, vector<32x32xf32>, vector<16x32xf32> -> vector<16x32xf32>
    %c0_16 = arith.constant 0 : index
    %c0_17 = arith.constant 0 : index
    %12 = vector.load %arg7[%c0_16, %c0_17] : memref<32x32xf32, #tpu.memory_space<vmem>>, vector<32x32xf32>
    %cst_18 = arith.constant dense<0.000000e+00> : vector<8x32xf32>
    %13 = tpu.matmul %1, %12, %cst_18 {dimension_numbers = #tpu.dot_dimension_numbers<[1], [0], [0], [1], [0, 0, 1, 1], [], []>} : vector<8x32xf32>, vector<32x32xf32>, vector<8x32xf32> -> vector<8x32xf32>
    %c0_19 = arith.constant 0 : index
    %c0_20 = arith.constant 0 : index
    %14 = vector.load %arg8[%c0_19, %c0_20] : memref<1x32xf32, #tpu.memory_space<vmem>>, vector<1x32xf32>
    %15 = vector.broadcast %14 : vector<1x32xf32> to vector<8x32xf32>
    %16 = arith.addf %13, %15 : vector<8x32xf32>
    %17 = tpu.transpose %11, [1, 0] : vector<16x32xf32> -> vector<32x16xf32>
    %cst_21 = arith.constant dense<0.000000e+00> : vector<8x16xf32>
    %18 = tpu.matmul %9, %17, %cst_21 {dimension_numbers = #tpu.dot_dimension_numbers<[1], [0], [0], [1], [0, 0, 1, 1], [], []>} : vector<8x32xf32>, vector<32x16xf32>, vector<8x16xf32> -> vector<8x16xf32>
    %cst_22 = arith.constant 5.000000e-01 : f32
    %19 = vector.broadcast %cst_22 : f32 to vector<8x16xf32>
    %20 = arith.cmpf ogt, %5, %19 : vector<8x16xf32>
    %cst_23 = arith.constant -1.000000e+09 : f32
    %21 = vector.broadcast %cst_23 : f32 to vector<8x16xf32>
    %22 = arith.select %20, %18, %21 : vector<8x16xi1>, vector<8x16xf32>
    %23 = tpu.iota {dimensions = array<i32: 1>} : vector<8x16xi32>
    %cst_24 = arith.constant dense<0xFF800000> : vector<8xf32>
    %24 = vector.multi_reduction <maximumf>, %22, %cst_24 [1] : vector<8x16xf32> to vector<8xf32>
    %25 = vector.shape_cast %24 : vector<8xf32> to vector<8x1xf32>
    %26 = vector.broadcast %25 : vector<8x1xf32> to vector<8x16xf32>
    %27 = arith.cmpf oeq, %22, %26 : vector<8x16xf32>
    %c16_i32 = arith.constant 16 : i32
    %28 = vector.broadcast %c16_i32 : i32 to vector<8x16xi32>
    %29 = arith.select %27, %23, %28 : vector<8x16xi1>, vector<8x16xi32>
    %cst_25 = arith.constant dense<2147483647> : vector<8xi32>
    %30 = vector.multi_reduction <minsi>, %29, %cst_25 [1] : vector<8x16xi32> to vector<8xi32>
    %31 = vector.shape_cast %30 : vector<8xi32> to vector<8x1xi32>
    %32 = vector.broadcast %31 : vector<8x1xi32> to vector<8x16xi32>
    %33 = arith.cmpi eq, %23, %32 : vector<8x16xi32>
    %34 = arith.extui %33 : vector<8x16xi1> to vector<8x16xi32>
    %35 = arith.sitofp %34 : vector<8x16xi32> to vector<8x16xf32>
    %cst_26 = arith.constant 5.000000e-01 : f32
    %36 = vector.broadcast %cst_26 : f32 to vector<8x16xf32>
    %37 = arith.cmpf ogt, %35, %36 : vector<8x16xf32>
    %cst_27 = arith.constant 0xFF800000 : f32
    %38 = vector.broadcast %cst_27 : f32 to vector<8x16xf32>
    %39 = arith.select %37, %38, %22 : vector<8x16xi1>, vector<8x16xf32>
    %cst_28 = arith.constant dense<0xFF800000> : vector<8xf32>
    %40 = vector.multi_reduction <maximumf>, %39, %cst_28 [1] : vector<8x16xf32> to vector<8xf32>
    %41 = vector.shape_cast %40 : vector<8xf32> to vector<8x1xf32>
    %42 = vector.broadcast %41 : vector<8x1xf32> to vector<8x16xf32>
    %43 = arith.cmpf oeq, %39, %42 : vector<8x16xf32>
    %c16_i32_29 = arith.constant 16 : i32
    %44 = vector.broadcast %c16_i32_29 : i32 to vector<8x16xi32>
    %45 = arith.select %43, %23, %44 : vector<8x16xi1>, vector<8x16xi32>
    %cst_30 = arith.constant dense<2147483647> : vector<8xi32>
    %46 = vector.multi_reduction <minsi>, %45, %cst_30 [1] : vector<8x16xi32> to vector<8xi32>
    %47 = vector.shape_cast %46 : vector<8xi32> to vector<8x1xi32>
    %48 = vector.broadcast %47 : vector<8x1xi32> to vector<8x16xi32>
    %49 = arith.cmpi eq, %23, %48 : vector<8x16xi32>
    %50 = arith.extui %49 : vector<8x16xi1> to vector<8x16xi32>
    %51 = arith.sitofp %50 : vector<8x16xi32> to vector<8x16xf32>
    %cst_31 = arith.constant 5.000000e-01 : f32
    %52 = vector.broadcast %cst_31 : f32 to vector<8x16xf32>
    %53 = arith.cmpf ogt, %51, %52 : vector<8x16xf32>
    %cst_32 = arith.constant 0xFF800000 : f32
    %54 = vector.broadcast %cst_32 : f32 to vector<8x16xf32>
    %55 = arith.select %53, %54, %39 : vector<8x16xi1>, vector<8x16xf32>
    %cst_33 = arith.constant dense<0xFF800000> : vector<8xf32>
    %56 = vector.multi_reduction <maximumf>, %55, %cst_33 [1] : vector<8x16xf32> to vector<8xf32>
    %57 = vector.shape_cast %56 : vector<8xf32> to vector<8x1xf32>
    %58 = vector.broadcast %57 : vector<8x1xf32> to vector<8x16xf32>
    %59 = arith.cmpf oeq, %55, %58 : vector<8x16xf32>
    %c16_i32_34 = arith.constant 16 : i32
    %60 = vector.broadcast %c16_i32_34 : i32 to vector<8x16xi32>
    %61 = arith.select %59, %23, %60 : vector<8x16xi1>, vector<8x16xi32>
    %cst_35 = arith.constant dense<2147483647> : vector<8xi32>
    %62 = vector.multi_reduction <minsi>, %61, %cst_35 [1] : vector<8x16xi32> to vector<8xi32>
    %63 = vector.shape_cast %62 : vector<8xi32> to vector<8x1xi32>
    %64 = vector.broadcast %63 : vector<8x1xi32> to vector<8x16xi32>
    %65 = arith.cmpi eq, %23, %64 : vector<8x16xi32>
    %66 = arith.extui %65 : vector<8x16xi1> to vector<8x16xi32>
    %67 = arith.sitofp %66 : vector<8x16xi32> to vector<8x16xf32>
    %cst_36 = arith.constant 5.000000e-01 : f32
    %68 = vector.broadcast %cst_36 : f32 to vector<8x16xf32>
    %69 = arith.cmpf ogt, %67, %68 : vector<8x16xf32>
    %cst_37 = arith.constant 0xFF800000 : f32
    %70 = vector.broadcast %cst_37 : f32 to vector<8x16xf32>
    %71 = arith.select %69, %70, %55 : vector<8x16xi1>, vector<8x16xf32>
    %cst_38 = arith.constant dense<0xFF800000> : vector<8xf32>
    %72 = vector.multi_reduction <maximumf>, %71, %cst_38 [1] : vector<8x16xf32> to vector<8xf32>
    %73 = vector.shape_cast %72 : vector<8xf32> to vector<8x1xf32>
    %74 = vector.broadcast %73 : vector<8x1xf32> to vector<8x16xf32>
    %75 = arith.cmpf oeq, %71, %74 : vector<8x16xf32>
    %c16_i32_39 = arith.constant 16 : i32
    %76 = vector.broadcast %c16_i32_39 : i32 to vector<8x16xi32>
    %77 = arith.select %75, %23, %76 : vector<8x16xi1>, vector<8x16xi32>
    %cst_40 = arith.constant dense<2147483647> : vector<8xi32>
    %78 = vector.multi_reduction <minsi>, %77, %cst_40 [1] : vector<8x16xi32> to vector<8xi32>
    %79 = vector.shape_cast %78 : vector<8xi32> to vector<8x1xi32>
    %80 = vector.broadcast %79 : vector<8x1xi32> to vector<8x16xi32>
    %81 = arith.cmpi eq, %23, %80 : vector<8x16xi32>
    %82 = arith.extui %81 : vector<8x16xi1> to vector<8x16xi32>
    %83 = arith.sitofp %82 : vector<8x16xi32> to vector<8x16xf32>
    %84 = tpu.concatenate %35, %51, %67, %83 in 0 : vector<8x16xf32>, vector<8x16xf32>, vector<8x16xf32>, vector<8x16xf32> -> vector<32x16xf32>
    %85 = tpu.concatenate %25, %41, %57, %73 in 1 : vector<8x1xf32>, vector<8x1xf32>, vector<8x1xf32>, vector<8x1xf32> -> vector<8x4xf32>
    %cst_41 = arith.constant dense<0xFF800000> : vector<8xf32>
    %86 = vector.multi_reduction <maximumf>, %85, %cst_41 [1] : vector<8x4xf32> to vector<8xf32>
    %87 = vector.shape_cast %86 : vector<8xf32> to vector<8x1xf32>
    %88 = vector.broadcast %87 : vector<8x1xf32> to vector<8x4xf32>
    %89 = arith.subf %85, %88 : vector<8x4xf32>
    %90 = math.exp %89 : vector<8x4xf32>
    %cst_42 = arith.constant dense<0.000000e+00> : vector<8xf32>
    %91 = vector.multi_reduction <add>, %90, %cst_42 [1] : vector<8x4xf32> to vector<8xf32>
    %92 = vector.shape_cast %91 : vector<8xf32> to vector<8x1xf32>
    %93 = vector.broadcast %92 : vector<8x1xf32> to vector<8x4xf32>
    %94 = arith.divf %90, %93 : vector<8x4xf32>
    %c0_43 = arith.constant 0 : index
    %c0_44 = arith.constant 0 : index
    %95 = vector.load %arg9[%c0_43, %c0_44] : memref<256x512xf32, #tpu.memory_space<vmem>>, vector<256x512xf32>
    %cst_45 = arith.constant dense<0.000000e+00> : vector<16x512xf32>
    %96 = tpu.matmul %7, %95, %cst_45 {dimension_numbers = #tpu.dot_dimension_numbers<[1], [0], [0], [1], [0, 0, 1, 1], [], []>} : vector<16x256xf32>, vector<256x512xf32>, vector<16x512xf32> -> vector<16x512xf32>
    %cst_46 = arith.constant dense<0.000000e+00> : vector<32x512xf32>
    %97 = tpu.matmul %84, %96, %cst_46 {dimension_numbers = #tpu.dot_dimension_numbers<[1], [0], [0], [1], [0, 0, 1, 1], [], []>} : vector<32x16xf32>, vector<16x512xf32>, vector<32x512xf32> -> vector<32x512xf32>
    %c0_47 = arith.constant 0 : index
    %c0_48 = arith.constant 0 : index
    %98 = vector.load %arg10[%c0_47, %c0_48] : memref<1x512xf32, #tpu.memory_space<vmem>>, vector<1x512xf32>
    %99 = vector.broadcast %98 : vector<1x512xf32> to vector<32x512xf32>
    %100 = arith.addf %97, %99 : vector<32x512xf32>
    %101 = vector.extract_strided_slice %100 {offsets = [0, 0], sizes = [32, 256], strides = [1, 1]} : vector<32x512xf32> to vector<32x256xf32>
    %102 = vector.extract_strided_slice %100 {offsets = [0, 256], sizes = [32, 256], strides = [1, 1]} : vector<32x512xf32> to vector<32x256xf32>
    %103 = tpu.concatenate %16, %16, %16, %16, %16, %16, %16, %16 in 1 : vector<8x32xf32>, vector<8x32xf32>, vector<8x32xf32>, vector<8x32xf32>, vector<8x32xf32>, vector<8x32xf32>, vector<8x32xf32>, vector<8x32xf32> -> vector<8x256xf32>
    %104 = tpu.concatenate %103, %103, %103, %103 in 0 : vector<8x256xf32>, vector<8x256xf32>, vector<8x256xf32>, vector<8x256xf32> -> vector<32x256xf32>
    %105 = arith.mulf %104, %101 : vector<32x256xf32>
    %c0_49 = arith.constant 0 : index
    %c0_50 = arith.constant 0 : index
    %106 = vector.load %arg11[%c0_49, %c0_50] : memref<256x16xf32, #tpu.memory_space<vmem>>, vector<256x16xf32>
    %cst_51 = arith.constant dense<0.000000e+00> : vector<32x16xf32>
    %107 = tpu.matmul %105, %106, %cst_51 {dimension_numbers = #tpu.dot_dimension_numbers<[1], [0], [0], [1], [0, 0, 1, 1], [], []>} : vector<32x256xf32>, vector<256x16xf32>, vector<32x16xf32> -> vector<32x16xf32>
    %cst_52 = arith.constant dense<0xFF800000> : vector<32xf32>
    %108 = vector.multi_reduction <maximumf>, %107, %cst_52 [1] : vector<32x16xf32> to vector<32xf32>
    %109 = vector.shape_cast %108 : vector<32xf32> to vector<32x1xf32>
    %110 = vector.broadcast %109 : vector<32x1xf32> to vector<32x16xf32>
    %111 = arith.subf %107, %110 : vector<32x16xf32>
    %112 = math.exp %111 : vector<32x16xf32>
    %c0_53 = arith.constant 0 : index
    %c0_54 = arith.constant 0 : index
    %113 = vector.load %arg13[%c0_53, %c0_54] : memref<16x16xf32, #tpu.memory_space<vmem>>, vector<16x16xf32>
    %cst_55 = arith.constant dense<0.000000e+00> : vector<32x16xf32>
    %114 = tpu.matmul %112, %113, %cst_55 {dimension_numbers = #tpu.dot_dimension_numbers<[1], [0], [0], [1], [0, 0, 1, 1], [], []>} : vector<32x16xf32>, vector<16x16xf32>, vector<32x16xf32> -> vector<32x16xf32>
    %115 = tpu.reciprocal %114 {approx = true} : vector<32x16xf32> -> vector<32x16xf32>
    %116 = arith.mulf %112, %115 : vector<32x16xf32>
    %c0_56 = arith.constant 0 : index
    %c0_57 = arith.constant 0 : index
    %117 = vector.load %arg12[%c0_56, %c0_57] : memref<16x256xf32, #tpu.memory_space<vmem>>, vector<16x256xf32>
    %cst_58 = arith.constant dense<0.000000e+00> : vector<32x256xf32>
    %118 = tpu.matmul %116, %117, %cst_58 {dimension_numbers = #tpu.dot_dimension_numbers<[1], [0], [0], [1], [0, 0, 1, 1], [], []>} : vector<32x16xf32>, vector<16x256xf32>, vector<32x256xf32> -> vector<32x256xf32>
    %119 = arith.mulf %118, %102 : vector<32x256xf32>
    %c0_59 = arith.constant 0 : index
    %c0_60 = arith.constant 0 : index
    %120 = vector.load %arg14[%c0_59, %c0_60] : memref<256x32xf32, #tpu.memory_space<vmem>>, vector<256x32xf32>
    %cst_61 = arith.constant dense<0.000000e+00> : vector<32x32xf32>
    %121 = tpu.matmul %119, %120, %cst_61 {dimension_numbers = #tpu.dot_dimension_numbers<[1], [0], [0], [1], [0, 0, 1, 1], [], []>} : vector<32x256xf32>, vector<256x32xf32>, vector<32x32xf32> -> vector<32x32xf32>
    %cst_62 = arith.constant 0.000000e+00 : f32
    %122 = vector.broadcast %cst_62 : f32 to vector<8x32xf32>
    %123 = vector.extract_strided_slice %94 {offsets = [0, 0], sizes = [8, 1], strides = [1, 1]} : vector<8x4xf32> to vector<8x1xf32>
    %124 = vector.extract_strided_slice %121 {offsets = [0, 0], sizes = [8, 32], strides = [1, 1]} : vector<32x32xf32> to vector<8x32xf32>
    %125 = vector.broadcast %123 : vector<8x1xf32> to vector<8x32xf32>
    %126 = arith.mulf %125, %124 : vector<8x32xf32>
    %127 = arith.addf %122, %126 : vector<8x32xf32>
    %128 = vector.extract_strided_slice %94 {offsets = [0, 1], sizes = [8, 1], strides = [1, 1]} : vector<8x4xf32> to vector<8x1xf32>
    %129 = vector.extract_strided_slice %121 {offsets = [8, 0], sizes = [8, 32], strides = [1, 1]} : vector<32x32xf32> to vector<8x32xf32>
    %130 = vector.broadcast %128 : vector<8x1xf32> to vector<8x32xf32>
    %131 = arith.mulf %130, %129 : vector<8x32xf32>
    %132 = arith.addf %127, %131 : vector<8x32xf32>
    %133 = vector.extract_strided_slice %94 {offsets = [0, 2], sizes = [8, 1], strides = [1, 1]} : vector<8x4xf32> to vector<8x1xf32>
    %134 = vector.extract_strided_slice %121 {offsets = [16, 0], sizes = [8, 32], strides = [1, 1]} : vector<32x32xf32> to vector<8x32xf32>
    %135 = vector.broadcast %133 : vector<8x1xf32> to vector<8x32xf32>
    %136 = arith.mulf %135, %134 : vector<8x32xf32>
    %137 = arith.addf %132, %136 : vector<8x32xf32>
    %138 = vector.extract_strided_slice %94 {offsets = [0, 3], sizes = [8, 1], strides = [1, 1]} : vector<8x4xf32> to vector<8x1xf32>
    %139 = vector.extract_strided_slice %121 {offsets = [24, 0], sizes = [8, 32], strides = [1, 1]} : vector<32x32xf32> to vector<8x32xf32>
    %140 = vector.broadcast %138 : vector<8x1xf32> to vector<8x32xf32>
    %141 = arith.mulf %140, %139 : vector<8x32xf32>
    %142 = arith.addf %137, %141 : vector<8x32xf32>
    %c0_63 = arith.constant 0 : index
    %c0_64 = arith.constant 0 : index
    %143 = vector.load %arg15[%c0_63, %c0_64] : memref<32x32xf32, #tpu.memory_space<vmem>>, vector<32x32xf32>
    %cst_65 = arith.constant dense<0.000000e+00> : vector<8x32xf32>
    %144 = tpu.matmul %142, %143, %cst_65 {dimension_numbers = #tpu.dot_dimension_numbers<[1], [0], [0], [1], [0, 0, 1, 1], [], []>} : vector<8x32xf32>, vector<32x32xf32>, vector<8x32xf32> -> vector<8x32xf32>
    %c0_66 = arith.constant 0 : index
    %c0_67 = arith.constant 0 : index
    %145 = vector.load %arg16[%c0_66, %c0_67] : memref<1x32xf32, #tpu.memory_space<vmem>>, vector<1x32xf32>
    %146 = vector.broadcast %145 : vector<1x32xf32> to vector<8x32xf32>
    %147 = arith.addf %144, %146 : vector<8x32xf32>
    %c0_68 = arith.constant 0 : index
    %c0_69 = arith.constant 0 : index
    %c0_70 = arith.constant 0 : index
    %148 = vector.load %arg17[%c0_68, %c0_69, %c0_70] : memref<1x8x32xf32, #tpu.memory_space<vmem>>, vector<1x8x32xf32>
    %149 = vector.shape_cast %148 : vector<1x8x32xf32> to vector<8x32xf32>
    %150 = vector.shape_cast %147 : vector<8x32xf32> to vector<1x8x32xf32>
    tpu.vector_store %arg17[%c0_68, %c0_69, %c0_70], %150 {strides = array<i32>} : memref<1x8x32xf32, #tpu.memory_space<vmem>>, vector<1x8x32xf32>,
    return
  }
  func.func @transform_0(%arg0: i32) -> (i32, i32, i32) {
    %c0_i32 = arith.constant 0 : i32
    %c0_i32_0 = arith.constant 0 : i32
    %c0_i32_1 = arith.constant 0 : i32
    return %arg0, %c0_i32, %c0_i32_0 : i32, i32, i32
  }
  func.func @transform_1(%arg0: i32) -> (i32, i32, i32) {
    %c0_i32 = arith.constant 0 : i32
    %c0_i32_0 = arith.constant 0 : i32
    %c0_i32_1 = arith.constant 0 : i32
    return %arg0, %c0_i32, %c0_i32_0 : i32, i32, i32
  }
  func.func @transform_2(%arg0: i32) -> (i32, i32, i32) {
    %c0_i32 = arith.constant 0 : i32
    %c0_i32_0 = arith.constant 0 : i32
    %c0_i32_1 = arith.constant 0 : i32
    return %arg0, %c0_i32, %c0_i32_0 : i32, i32, i32
  }
  func.func @transform_3(%arg0: i32) -> (i32, i32, i32) {
    %c0_i32 = arith.constant 0 : i32
    %c0_i32_0 = arith.constant 0 : i32
    %c0_i32_1 = arith.constant 0 : i32
    return %arg0, %c0_i32, %c0_i32_0 : i32, i32, i32
  }
  func.func @transform_4(%arg0: i32) -> (i32, i32) {
    %c0_i32 = arith.constant 0 : i32
    %c0_i32_0 = arith.constant 0 : i32
    %c0_i32_1 = arith.constant 0 : i32
    return %c0_i32, %c0_i32_0 : i32, i32
  }
  func.func @transform_5(%arg0: i32) -> (i32, i32) {
    %c0_i32 = arith.constant 0 : i32
    %c0_i32_0 = arith.constant 0 : i32
    %c0_i32_1 = arith.constant 0 : i32
    return %c0_i32, %c0_i32_0 : i32, i32
  }
  func.func @transform_6(%arg0: i32) -> (i32, i32) {
    %c0_i32 = arith.constant 0 : i32
    %c0_i32_0 = arith.constant 0 : i32
    %c0_i32_1 = arith.constant 0 : i32
    return %c0_i32, %c0_i32_0 : i32, i32
  }
  func.func @transform_7(%arg0: i32) -> (i32, i32) {
    %c0_i32 = arith.constant 0 : i32
    %c0_i32_0 = arith.constant 0 : i32
    %c0_i32_1 = arith.constant 0 : i32
    return %c0_i32, %c0_i32_0 : i32, i32
  }
  func.func @transform_8(%arg0: i32) -> (i32, i32) {
    %c0_i32 = arith.constant 0 : i32
    %c0_i32_0 = arith.constant 0 : i32
    %c0_i32_1 = arith.constant 0 : i32
    return %c0_i32, %c0_i32_0 : i32, i32
  }
  func.func @transform_9(%arg0: i32) -> (i32, i32) {
    %c0_i32 = arith.constant 0 : i32
    %c0_i32_0 = arith.constant 0 : i32
    %c0_i32_1 = arith.constant 0 : i32
    return %c0_i32, %c0_i32_0 : i32, i32
  }
  func.func @transform_10(%arg0: i32) -> (i32, i32) {
    %c0_i32 = arith.constant 0 : i32
    %c0_i32_0 = arith.constant 0 : i32
    %c0_i32_1 = arith.constant 0 : i32
    return %c0_i32, %c0_i32_0 : i32, i32
  }
  func.func @transform_11(%arg0: i32) -> (i32, i32) {
    %c0_i32 = arith.constant 0 : i32
    %c0_i32_0 = arith.constant 0 : i32
    %c0_i32_1 = arith.constant 0 : i32
    return %c0_i32, %c0_i32_0 : i32, i32
  }
  func.func @transform_12(%arg0: i32) -> (i32, i32) {
    %c0_i32 = arith.constant 0 : i32
    %c0_i32_0 = arith.constant 0 : i32
    %c0_i32_1 = arith.constant 0 : i32
    return %c0_i32, %c0_i32_0 : i32, i32
  }
  func.func @transform_13(%arg0: i32) -> (i32, i32) {
    %c0_i32 = arith.constant 0 : i32
    %c0_i32_0 = arith.constant 0 : i32
    %c0_i32_1 = arith.constant 0 : i32
    return %c0_i32, %c0_i32_0 : i32, i32
  }
  func.func @transform_14(%arg0: i32) -> (i32, i32) {
    %c0_i32 = arith.constant 0 : i32
    %c0_i32_0 = arith.constant 0 : i32
    %c0_i32_1 = arith.constant 0 : i32
    return %c0_i32, %c0_i32_0 : i32, i32
  }
  func.func @transform_15(%arg0: i32) -> (i32, i32) {
    %c0_i32 = arith.constant 0 : i32
    %c0_i32_0 = arith.constant 0 : i32
    %c0_i32_1 = arith.constant 0 : i32
    return %c0_i32, %c0_i32_0 : i32, i32
  }
  func.func @transform_16(%arg0: i32) -> (i32, i32, i32) {
    %c0_i32 = arith.constant 0 : i32
    %c0_i32_0 = arith.constant 0 : i32
    %c0_i32_1 = arith.constant 0 : i32
    return %arg0, %c0_i32, %c0_i32_0 : i32, i32, i32
  }
}

</mosaic_0001>

<bundles_post_ra>
// kernel: tpu_custom_call.1
= control target key start
LH: loop header
LB: loop body
LE: loop exit
PB: predicated region body
PF: predicated region fallthrough
CT: control target
= control target key end

     0   :  { %s3638_s0 = inlined_call_operand.vmem [shape: f32[2,8,32], index: 0, kind: input, shape index: {}]   ;;  %s3639_s1 = inlined_call_operand.vmem [shape: f32[2,16,32], index: 1, kind: input, shape index: {}]   ;;  %s3640_s2 = inlined_call_operand.vmem [shape: f32[2,16,256], index: 2, kind: input, shape index: {}]   ;;  %s3641_s3 = inlined_call_operand.vmem [shape: f32[2,8,16], index: 3, kind: input, shape index: {}]   ;;  %s3642_s4 = inlined_call_operand.vmem [shape: f32[32,32], index: 4, kind: input, shape index: {}]   ;;  %s3643_s5 = inlined_call_operand.vmem [shape: f32[32,32], index: 5, kind: input, shape index: {}]   ;;  %s3644_s6 = inlined_call_operand.vmem [shape: f32[32,32], index: 6, kind: input, shape index: {}]   ;;  %s3645_s7 = inlined_call_operand.vmem [shape: f32[1,32], index: 7, kind: input, shape index: {}]   ;;  %s3646_s8 = inlined_call_operand.hbm [shape: f32[256,512], index: 8, kind: input, shape index: {}]   ;;  %s3647_s9 = inlined_call_operand.vmem [shape: f32[1,512], index: 9, kind: input, shape index: {}]   ;;  %s3648_s10 = inlined_call_operand.vmem [shape: f32[256,16], index: 10, kind: input, shape index: {}]   ;;  %s3649_s11 = inlined_call_operand.vmem [shape: f32[16,256], index: 11, kind: input, shape index: {}]   ;;  %s3650_s12 = inlined_call_operand.vmem [shape: f32[16,16], index: 12, kind: input, shape index: {}]   ;;  %s3651_s13 = inlined_call_operand.vmem [shape: f32[256,32], index: 13, kind: input, shape index: {}]   ;;  %s3652_s14 = inlined_call_operand.vmem [shape: f32[32,32], index: 14, kind: input, shape index: {}]   ;;  %s3653_s15 = inlined_call_operand.vmem [shape: f32[1,32], index: 15, kind: input, shape index: {}]   ;;  %s3654_s16 = inlined_call_operand.hbm [shape: f32[2,8,32], index: 16, kind: output, shape index: {}]  }
   0x1   :  { %3664 = sst [smem:[#allocation14_spill]] %s3638_s0 }
   0x2   :  { %3665 = sst [smem:[#allocation15_spill]] %s3642_s4 }
   0x3   :  { %3666 = sst [smem:[#allocation16_spill]] %s3646_s8 }
   0x4   :  { %21 = vsyncpa [#allocation3], 0 }
   0x5   :  { %22 = vsyncpa [#allocation4], 0 }
   0x6   :  { %24 = vsyncpa [#allocation4 + $0x1], 0  ;;  %s3015_s21 = smov 0   ;;  %s3017_s22 = smov 0  }
   0x7   :  { %s3019_s23 = smov 0   ;;  %s3021_s24 = smov 0  }
   0x8 LB: > { %3667 = sst [smem:[#allocation8_spill]] %s2902_s21  ;;  %s3036_s25 = sadd.s32 4294967295, %s2914_s24   ;;  %s2914_s24 = sphi %s3021_s24, %s3688_s24   ;;  %s2910_s23 = sphi %s3019_s23, %s3690_s23   ;;  %s2906_s22 = sphi %s3017_s22, %s3692_s22   ;;  %s2902_s21 = sphi %s3015_s21, %s3691_s21  }
   0x9   : > { %3668 = sst [smem:[#allocation9_spill]] %s2910_s23  ;;  %s2267_s26 = sadd.s32 4294967294, %s2914_s24  }
   0xa   : > { %3669 = sst [smem:[#allocation10_spill]] %s2914_s24  ;;  %s3040_s27 = sadd.s32 1, %s2914_s24  }
   0xb   : > { %3670 = sst [smem:[#allocation11_spill]] %s3040_s27  ;;  %s393_s28 = sadd.s32 1, %s2910_s23 }
   0xc   : > { %s390_s29 = ssub.s32 %s2914_s24, %s3040_s27  ;;  %p403_p0 = scmp.ne.s32.totalorder %s2910_s23, %s2906_s22 }
   0xd   : > { %p391_p1 = scmp.eq.s32.totalorder %s390_s29, 0  ;;  %p404_p2 = scmp.eq.s32.totalorder %s3036_s25, 1 }
   0xe   : > { %p409_p3 = scmp.ne.s32.totalorder %s2906_s22, %s2902_s21  ;;  %p410_p4 = scmp.eq.s32.totalorder %s2267_s26, 1 }
   0xf   : > { %s3051_s30 = scalar_select %p391_p1, %s2910_s23, %s393_s28  }
  0x10   : > { %p3053_p5 = por %p404_p2, %p403_p0  ;;  %p3057_p6 = por %p410_p4, %p409_p3 }
  0x11   : > { %3671 = sst [smem:[#allocation12_spill]] %s3051_s30  ;;  %p2268_p7 = scmp.ge.s32.totalorder %s2914_s24, 1 }
  0x12   : > { %s3672_s0 = scalar_select %p3053_p5, 1, 0 }
  0x13   : > { %s3673_s17 = scalar_select %p3057_p6, 1, 0 }
  0x14   : > { %p417_p8 = scmp.lt.s32.totalorder %s2914_s24, 3  ;;  %p3660_p9 = scmp.eq.s32.totalorder %s3036_s25, 0 }
  0x15   : > { %3674 = sst [smem:[#allocation13_spill]] %s3673_s17  ;;  %s2916_s19 = smov [#allocation2]  }
  0x16   : > { %p3064_p10 = pnand %p2268_p7, %p417_p8  ;;  %s441_s20 = sshll.u32 %s2916_s19, 4  ;;  %s442_s20 = int_to_ptr.vmem [resolvable:$true] %s441_s20 }
  0x17   : > { %s3677_s8 = sld [smem:[#allocation16_spill]] }
  0x18   : > { %s3675_s18 = scalar_select %p3064_p10, 1, 0 }
  0x19   : > { %p2739_p11 = pneg %p3064_p10 }
  0x1b   : > { %p3072_p12 = pnand %p3660_p9, %p2739_p11 }
  0x1d   : > { %s2820_s30 = scalar_lea.hbm %s3677_s8, 16384  ;;  %p2822_p0 = pneg %p3072_p12 }
  0x1e   : > { %p2821_p13 = scmp.ne.s32.totalorder %s3677_s8, %s2820_s30  ;;  %p2827_p3 = scmp.lt.u32.totalorder %s2820_s30, %s3677_s8 }
  0x20   : > { %p2823_p1 = pnand %p2822_p0, %p2821_p13 }
  0x22   : > { %p2824_p2 = pneg %p2823_p1 }
  0x24   : > { %p2829_p4 = pnand %p2827_p3, %p2824_p2 }
  0x26   : > { %2832 = shalt.err (!%p2829_p4)
}
  0x27   : > { %s2833_s21 = scalar_lea.vmem %s442_s20, 16384  ;;  %p2841_p9 = scmp.lt.s32.totalorder %s442_s20, %s442_s20 }
  0x28   : > { %p2834_p7 = scmp.ne.s32.totalorder %s442_s20, %s2833_s21  ;;  %p2842_p6 = scmp.lt.s32.totalorder %s2833_s21, %s2833_s21 }
  0x2a   : > { %p2836_p8 = pnand %p2834_p7, %p2822_p0  ;;  %p2843_p5 = por %p2842_p6, %p2841_p9 }
  0x2c   : > { %p2837_p11 = pneg %p2836_p8 }
  0x2e   : > { %p2844_p10 = pnand %p2843_p5, %p2837_p11 }
  0x30   : > { %2847 = shalt.err (!%p2844_p10)
}
  0x31   : > { %s2917_s23 = smov 512   ;;  %s2918_s27 = smov 32  }
  0x32   : > { %2742 = dma.hbm_to_vmem [thread:$0]  (!%p3072_p12), %s3677_s8, 16384, %s442_s20, [#allocation3], %s2917_s23, %s2917_s23, %s2918_s27  }
  0x33   : > { %p3678_p13 = scmp.ne.s32.totalorder %s3675_s18, 0 }
  0x34   : > { %p3679_p1 = scmp.eq.s32.totalorder (!%p3678_p13), %s3036_s25, 0 }
  0x35   : > { %508 = sbr.rel (%p3678_p13) target bundleno = 3778 (0xec2), region = 84 }
  0x3c   : > { %2893 = dma.done.wait (%p3679_p1), [#allocation3], 16384   ;;  %p3680_p0 = pmov %p3679_p1 }
  0x3d   : > { %p571_p5 = scmp.lt.s32.totalorder %s3036_s25, 1  ;;  %v2919_v0 = vmov 0.0|0.0   ;;  %vm2920_vm0 = vmmov 0   ;;  %v2921_v1 = vmov 0.0   ;;  %s3681_s4 = sld [smem:[#allocation15_spill]]  ;;  %v675_v7 = vld [vmem:[%s3643_s5] sm:$0xff] }
  0x3e   : > { %2895 = vsyncadd (%p3680_p0), [#allocation3], 4294950912  ;;  %2495 = vmatprep.subr.bf16.mxu0 %v2919_v0  ;;  %2442 = vmatprep.mubr.msk.f32.mxu0 %vm2920_vm0, %v2921_v1  ;;  %v676_v8 = vld [vmem:[%s3643_s5 + $0x8] sm:$0xff]  ;;  %s3682_s19 = sld [smem:[#allocation14_spill]]  ;;  %v677_v11 = vld [vmem:[%s3643_s5 + $0x10] sm:$0xff]  ;;  %vm601_vm1 = vcmask 261120  }
  0x3f   : > { %2515 = vmatprep.subr.bf16.mxu1 %v2919_v0  ;;  %2471 = vmatprep.mubr.msk.f32.mxu1 %vm2920_vm0, %v2921_v1  ;;  %s3106_s21 = scalar_select %p571_p5, %s3036_s25, 1  ;;  %v2501_v10 = vpack.c.bf16 %v676_v8, %v675_v7  ;;  %v678_v12 = vld [vmem:[%s3643_s5 + $0x18] sm:$0xff]  ;;  %vm2517_vm2 = vmpackc.low %vm601_vm1, %vm601_vm1  ;;  %vm924_vm4 = vcmask 130048   ;;  %v760_v27 = vld [vmem:[%s3644_s6] sm:$0xff] }
  0x40   : > { %v2505_v14 = vpack.c.bf16 %v678_v12, %v677_v11  ;;  %v761_v28 = vld [vmem:[%s3644_s6 + $0x8] sm:$0xff]  ;;  %v762_v30 = vld [vmem:[%s3644_s6 + $0x10] sm:$0xff]  ;;  %v763_v31 = vld [vmem:[%s3644_s6 + $0x18] sm:$0xff]  ;;  %p3683_p9 = scmp.ne.s32.totalorder %s3672_s0, 0 }
  0x41   : > { %s2274_s28 = sshll.u32 %s3106_s21, 3  ;;  %s2314_s18 = sshll.u32 %s3106_s21, 4  ;;  %v2510_v29 = vpack.c.bf16 %v761_v28, %v760_v27  ;;  %v2513_v32 = vpack.c.bf16 %v763_v31, %v762_v30  ;;  %v1042_v33 = vld [vmem:[#allocation2 + $0x8] sm:$0xff]  ;;  %v1044_v35 = vld [vmem:[#allocation2 + $0x18] sm:$0xff]  ;;  %v1041_v38 = vld [vmem:[#allocation2] sm:$0xff] }
  0x42   : > { %s579_s24 = scalar_lea.vmem %s3639_s1, %s2314_s18  ;;  %s588_s18 = scalar_lea.vmem %s3641_s3, %s2274_s28  ;;  %v1046_v34 = vld [vmem:[#allocation2 + $0x28] sm:$0xff]  ;;  %v1048_v37 = vld [vmem:[#allocation2 + $0x38] sm:$0xff]  ;;  %v1045_v39 = vld [vmem:[#allocation2 + $0x20] sm:$0xff] }
  0x43   : > { %v597_v2 = vld [vmem:[%s3681_s4] sm:$0xff]  ;;  %v598_v3 = vld [vmem:[%s3681_s4 + $0x8] sm:$0xff]  ;;  %v599_v4 = vld [vmem:[%s3681_s4 + $0x10] sm:$0xff]  ;;  %v2519_v36 = vpack.c.bf16 %v1046_v34, %v1042_v33  ;;  %v2583_v40 = vpack.c.bf16 %v1048_v37, %v1044_v35  ;;  %v2521_v41 = vpack.c.bf16 %v1045_v39, %v1041_v38  ;;  %s2315_s8 = sshll.u32 %s3106_s21, 5  ;;  %s2924_s21 = smov 96  }
  0x44   : > { %v2496_v5 = vpack.c.bf16 %v598_v3, %v597_v2  ;;  %v600_v6 = vld [vmem:[%s3681_s4 + $0x18] sm:$0xff]  ;;  %s574_s23 = scalar_lea.vmem %s3682_s19, %s2274_s28  ;;  %v590_v15 = vld [vmem:[%s579_s24] sm:$0xff]  ;;  %v591_v16 = vld [vmem:[%s579_s24 + $0x8] sm:$0xff]  ;;  %s3183_s24 = scalar_lea.vmem %s3640_s2, %s2315_s8 }
  0x45   : > { %v2499_v9 = vpack.c.bf16 %v600_v6, %v599_v4  ;;  %v3143_v13 = vld [vmem:[%s574_s23] sm:$0xff]  ;;  %v1043_v42 = vld [vmem:[#allocation2 + $0x10] sm:$0xff]  ;;  %v1050_v44 = vld [vmem:[#allocation2 + $0x48] sm:$0xff]  ;;  %s2922_s19 = smov 32   ;;  %s2923_s23 = smov 64  }
  0x46   : > { %2497 = vmatpush3.bf16.msra.mxu0 %v2496_v5  ;;  %v592_v22 = vld [vmem:[%s588_s18] sm:$0xff]  ;;  %v1047_v43 = vld [vmem:[#allocation2 + $0x30] sm:$0xff]  ;;  %v1054_v46 = vld [vmem:[#allocation2 + $0x68] sm:$0xff]  ;;  %s568_s18 = sand.u32 1, %s2906_s22  }
  0x47   : > { %2498 = vmatprep.subr.bf16.mxu0 %v2919_v0  ;;  %vm920_vm3 = vcmp.gt.f32.partialorder %v592_v22, 0.5  ;;  %v2585_v45 = vpack.c.bf16 %v1047_v43, %v1043_v42  ;;  %v1052_v47 = vld [vmem:[#allocation2 + $0x58] sm:$0xff]  ;;  %v2523_v49 = vpack.c.bf16 %v1054_v46, %v1050_v44  ;;  %v1049_v51 = vld [vmem:[#allocation2 + $0x40] sm:$0xff]  ;;  %v1051_v53 = vld [vmem:[#allocation2 + $0x50] sm:$0xff]  ;;  %s2273_s20 = sshll.u32 %s568_s18, 3  ;;  %s2147_s17 = scalar_lea.sflag [#allocation4], %s568_s18 }
  0x48   : > { %v1056_v48 = vld [vmem:[#allocation2 + $0x78] sm:$0xff]  ;;  %v1053_v52 = vld [vmem:[#allocation2 + $0x60] sm:$0xff]  ;;  %v1055_v54 = vld [vmem:[#allocation2 + $0x70] sm:$0xff]  ;;  %s570_s28 = scalar_lea.vmem [#allocation5], %s2273_s20 }
  0x49   : > { %v2587_v50 = vpack.c.bf16 %v1056_v48, %v1052_v47  ;;  %v1058_v55 = vld [vmem:[#allocation2 + $0x88] sm:$0xff]  ;;  %v2525_v57 = vpack.c.bf16 %v1053_v52, %v1049_v51  ;;  %v2589_v58 = vpack.c.bf16 %v1055_v54, %v1051_v53  ;;  %v1060_v59 = vld [vmem:[#allocation2 + $0x98] sm:$0xff]  ;;  %v1057_v61 = vld [vmem:[#allocation2 + $0x80] sm:$0xff]  ;;  %s2160_s27 = sshll.u32 %s570_s28, 4  ;;  %s3597_s27 = int_to_ptr.vmem [resolvable:$true] %s2160_s27 }
  0x4a   : > { %2500 = vmatpush3.bf16.msra.mxu0 %v2499_v9  ;;  %v1062_v56 = vld [vmem:[#allocation2 + $0xa8] sm:$0xff]  ;;  %v1064_v60 = vld [vmem:[#allocation2 + $0xb8] sm:$0xff]  ;;  %v1061_v2 = vld [vmem:[#allocation2 + $0xa0] sm:$0xff]  ;;  %s2848_s4 = scalar_lea.vmem %s3597_s27, 128 }
  0x4b   : > { %2502 = vmatprep.subr.bf16.mxu0 %v2501_v10  ;;  %v2527_v62 = vpack.c.bf16 %v1062_v56, %v1058_v55  ;;  %v2591_v63 = vpack.c.bf16 %v1064_v60, %v1060_v59  ;;  %v1059_v3 = vld [vmem:[#allocation2 + $0x90] sm:$0xff]  ;;  %v1066_v5 = vld [vmem:[#allocation2 + $0xc8] sm:$0xff]  ;;  %v1068_v7 = vld [vmem:[#allocation2 + $0xd8] sm:$0xff]  ;;  %p2849_p6 = scmp.ne.s32.totalorder %s3597_s27, %s2848_s4 }
  0x4c   : > { %v1063_v4 = vld [vmem:[#allocation2 + $0xb0] sm:$0xff]  ;;  %v1070_v6 = vld [vmem:[#allocation2 + $0xe8] sm:$0xff]  ;;  %v1072_v9 = vld [vmem:[#allocation2 + $0xf8] sm:$0xff] }
  0x4d   : > { %2443 = vmatmul.mubr.msk.f32.vlgmr.msra.gmra.mrb[0].mxu0 %vm601_vm1, %v3143_v13  ;;  %v2593_v8 = vpack.c.bf16 %v1063_v4, %v1059_v3  ;;  %v2595_v11 = vpack.c.bf16 %v1072_v9, %v1068_v7  ;;  %v1065_v12 = vld [vmem:[#allocation2 + $0xc0] sm:$0xff]  ;;  %v1079_v27 = vld [vmem:[#allocation2 + $0x130] sm:$0xff]  ;;  %v1084_v30 = vld [vmem:[#allocation2 + $0x158] sm:$0xff]  ;;  %p2850_p10 = pnand %p2849_p6, %p3683_p9 }
  0x4e   : > { %2504 = vmatpush3.bf16.msra.mxu0 %v2501_v10  ;;  %2453 = vmatprep.mubr.msk.f32.mxu0 %vm601_vm1, %v590_v15  ;;  %v2529_v10 = vpack.c.bf16 %v1061_v2, %v1057_v61  ;;  %v2531_v15 = vpack.c.bf16 %v1070_v6, %v1066_v5  ;;  %v1088_v31 = vld [vmem:[#allocation2 + $0x178] sm:$0xff]  ;;  %v1086_v33 = vld [vmem:[#allocation2 + $0x168] sm:$0xff]  ;;  %v1081_v37 = vld [vmem:[#allocation2 + $0x140] sm:$0xff] }
  0x4f   : > { %2506 = vmatprep.subr.bf16.mxu0 %v2505_v14  ;;  %v1083_v38 = vld [vmem:[#allocation2 + $0x150] sm:$0xff]  ;;  %v1092_v42 = vld [vmem:[#allocation2 + $0x198] sm:$0xff]  ;;  %v1090_v44 = vld [vmem:[#allocation2 + $0x188] sm:$0xff]  ;;  %p2851_p12 = pneg %p2850_p10 }
  0x50   : > { %v1087_v39 = vld [vmem:[#allocation2 + $0x170] sm:$0xff]  ;;  %v1096_v43 = vld [vmem:[#allocation2 + $0x1b8] sm:$0xff]  ;;  %v1093_v53 = vld [vmem:[#allocation2 + $0x1a0] sm:$0xff] }
  0x51   : > { %v2605_v46 = vpack.c.bf16 %v1087_v39, %v1083_v38  ;;  %v2607_v48 = vpack.c.bf16 %v1096_v43, %v1092_v42  ;;  %v1095_v51 = vld [vmem:[#allocation2 + $0x1b0] sm:$0xff]  ;;  %v1100_v54 = vld [vmem:[#allocation2 + $0x1d8] sm:$0xff]  ;;  %v1098_v56 = vld [vmem:[#allocation2 + $0x1c8] sm:$0xff] }
  0x52   : > { %2508 = vmatpush3.bf16.msra.mxu0 %v2505_v14  ;;  %v1071_v14 = vld [vmem:[#allocation2 + $0xf0] sm:$0xff]  ;;  %v1104_v55 = vld [vmem:[#allocation2 + $0x1f8] sm:$0xff]  ;;  %v1097_v61 = vld [vmem:[#allocation2 + $0x1c0] sm:$0xff] }
  0x53   : > { %2509 = vmatprep.subr.bf16.mxu0 %v2919_v0  ;;  %v2611_v60 = vpack.c.bf16 %v1104_v55, %v1100_v54  ;;  %v1101_v3 = vld [vmem:[#allocation2 + $0x1e0] sm:$0xff]  ;;  %v1108_v4 = vld [vmem:[#allocation2 + $0x218] sm:$0xff]  ;;  %v1106_v6 = vld [vmem:[#allocation2 + $0x208] sm:$0xff] }
  0x54   : > { %v1112_v5 = vld [vmem:[#allocation2 + $0x238] sm:$0xff]  ;;  %v1110_v7 = vld [vmem:[#allocation2 + $0x228] sm:$0xff]  ;;  %v2549_v9 = vpack.c.bf16 %v1101_v3, %v1097_v61  ;;  %v1127_v38 = vld [vmem:[#allocation2 + $0x2b0] sm:$0xff] }
  0x55   : > { %2454 = vmatmul.mubr.msk.f32.vlgmr.msra.gmra.mrb[2].mxu0 %vm601_vm1, %v591_v16  ;;  %v1069_v16 = vld [vmem:[#allocation2 + $0xe0] sm:$0xff]  ;;  %v1136_v42 = vld [vmem:[#allocation2 + $0x2f8] sm:$0xff]  ;;  %v1130_v43 = vld [vmem:[#allocation2 + $0x2c8] sm:$0xff] }
  0x56   : > { %2464 = vmatprep.mubr.msk.f32.mxu0 %vm2920_vm0, %v2921_v1  ;;  %2511 = vmatpush3.bf16.msra.mxu0 %v2510_v29  ;;  %v2533_v22 = vpack.c.bf16 %v1069_v16, %v1065_v12  ;;  %v1077_v29 = vld [vmem:[#allocation2 + $0x120] sm:$0xff]  ;;  %v1107_v12 = vld [vmem:[#allocation2 + $0x210] sm:$0xff]  ;;  %v1116_v16 = vld [vmem:[#allocation2 + $0x258] sm:$0xff] }
  0x57   : > { %2512 = vmatprep.subr.bf16.mxu0 %v2919_v0  ;;  %v1140_v54 = vld [vmem:[#allocation2 + $0x318] sm:$0xff]  ;;  %v1137_v61 = vld [vmem:[#allocation2 + $0x300] sm:$0xff] }
  0x58   : > { %v1144_v55 = vld [vmem:[#allocation2 + $0x338] sm:$0xff]  ;;  %v1141_v3 = vld [vmem:[#allocation2 + $0x320] sm:$0xff] }
  0x5a   : > { %2514 = vmatpush3.bf16.msra.mxu0 %v2513_v32  ;;  %v1082_v32 = vld [vmem:[#allocation2 + $0x148] sm:$0xff] }
  0x5b   : > { %2520 = vmatprep.subr.bf16.mxu0 %v2519_v36  ;;  %v2603_v36 = vpack.c.bf16 %v1088_v31, %v1084_v30  ;;  %v1128_v30 = vld [vmem:[#allocation2 + $0x2b8] sm:$0xff]  ;;  %v1122_v31 = vld [vmem:[#allocation2 + $0x288] sm:$0xff] }
  0x5d   : > { %2465 = vmatmul.mubr.msk.f32.vlgmr.msra.gmra.mrb[4].mxu0 %vm601_vm1, %v3143_v13  ;;  %v1067_v13 = vld [vmem:[#allocation2 + $0xd0] sm:$0xff] }
  0x5e   : > { %2522 = vmatpush1.bf16.msra.mxu0 %v2521_v41  ;;  %v1085_v41 = vld [vmem:[#allocation2 + $0x160] sm:$0xff] }
  0x5f   : > { %2524 = vmatprep.subr.bf16.mxu0 %v2523_v49  ;;  %v2541_v47 = vpack.c.bf16 %v1085_v41, %v1081_v37  ;;  %v1089_v49 = vld [vmem:[#allocation2 + $0x180] sm:$0xff]  ;;  %v1123_v37 = vld [vmem:[#allocation2 + $0x290] sm:$0xff]  ;;  %v1132_v41 = vld [vmem:[#allocation2 + $0x2d8] sm:$0xff] }
  0x60   : > { %v2545_v59 = vpack.c.bf16 %v1093_v53, %v1089_v49  ;;  %v1131_v49 = vld [vmem:[#allocation2 + $0x2d0] sm:$0xff]  ;;  %v1133_v53 = vld [vmem:[#allocation2 + $0x2e0] sm:$0xff] }
  0x62   : > { %2526 = vmatpush1.bf16.msra.mxu0 %v2525_v57  ;;  %v1102_v57 = vld [vmem:[#allocation2 + $0x1e8] sm:$0xff] }
  0x63   : > { %2528 = vmatprep.subr.bf16.mxu0 %v2527_v62  ;;  %v1099_v62 = vld [vmem:[#allocation2 + $0x1d0] sm:$0xff]  ;;  %v2547_v2 = vpack.c.bf16 %v1102_v57, %v1098_v56  ;;  %v1138_v56 = vld [vmem:[#allocation2 + $0x308] sm:$0xff] }
  0x64   : > { %v1142_v57 = vld [vmem:[#allocation2 + $0x328] sm:$0xff] }
  0x66   : > { %2530 = vmatpush1.bf16.msra.mxu0 %v2529_v10  ;;  %v2615_v10 = vpack.c.bf16 %v1112_v5, %v1108_v4  ;;  %v1148_v4 = vld [vmem:[#allocation2 + $0x358] sm:$0xff] }
  0x67   : > { %2532 = vmatprep.subr.bf16.mxu0 %v2531_v15  ;;  %v1109_v15 = vld [vmem:[#allocation2 + $0x220] sm:$0xff]  ;;  %v1152_v5 = vld [vmem:[#allocation2 + $0x378] sm:$0xff] }
  0x6a   : > { %2534 = vmatpush1.bf16.msra.mxu0 %v2533_v22 }
 0x120   : > { %v671_v17 = vpop.f32.mrb[0].mxu0 }
 0x121   : > { %v2444_v18 = vpop.f32.mrb[1].mxu0 }
 0x122   : > { %v1080_v18 = vld [vmem:[#allocation2 + $0x138] sm:$0xff] }
 0x128   : > { %v2455_v19 = vpop.f32.mrb[2].mxu0 }
 0x129   : > { %v751_v20 = vpop.f32.mrb[3].mxu0 }
 0x12a   : > { %v2516_v21 = vpack.c.bf16 %v2455_v19, %v751_v20  ;;  %v1074_v19 = vld [vmem:[#allocation2 + $0x108] sm:$0xff] }
 0x12b   : > { %v1078_v20 = vld [vmem:[#allocation2 + $0x128] sm:$0xff] }
 0x12c   : > { %2518 = vmatpush3.bf16.xpose.msk.msra.mxu1 %vm2517_vm2, %v2516_v21  ;;  %v2597_v21 = vpack.c.bf16 %v1071_v14, %v1067_v13  ;;  %v2535_v28 = vpack.c.bf16 %v1078_v20, %v1074_v19  ;;  %v1111_v13 = vld [vmem:[#allocation2 + $0x230] sm:$0xff]  ;;  %v2551_v14 = vpack.c.bf16 %v1110_v7, %v1106_v6  ;;  %v1118_v19 = vld [vmem:[#allocation2 + $0x268] sm:$0xff] }
 0x12d   : > { %2584 = vmatprep.subr.bf16.mxu1 %v2583_v40  ;;  %v2539_v40 = vpack.c.bf16 %v1086_v33, %v1082_v32  ;;  %v2617_v20 = vpack.c.bf16 %v1111_v13, %v1107_v12  ;;  %v1126_v32 = vld [vmem:[#allocation2 + $0x2a8] sm:$0xff]  ;;  %v1147_v12 = vld [vmem:[#allocation2 + $0x350] sm:$0xff] }
 0x12e   : > { %2536 = vmatprep.subr.bf16.mxu0 %v2535_v28  ;;  %v1117_v28 = vld [vmem:[#allocation2 + $0x260] sm:$0xff]  ;;  %v2559_v39 = vpack.c.bf16 %v1126_v32, %v1122_v31  ;;  %v1146_v6 = vld [vmem:[#allocation2 + $0x348] sm:$0xff]  ;;  %v1151_v13 = vld [vmem:[#allocation2 + $0x370] sm:$0xff] }
 0x12f   : > { %v1150_v7 = vld [vmem:[#allocation2 + $0x368] sm:$0xff] }
 0x130   : > { %v1162_v31 = vld [vmem:[#allocation2 + $0x3c8] sm:$0xff] }
 0x131   : > { %v1166_v32 = vld [vmem:[#allocation2 + $0x3e8] sm:$0xff] }
 0x133   : > { %2472 = vmatmul.mubr.msk.f32.vlgmr.msra.gmra.mrb[0].mxu1 %vm601_vm1, %v671_v17  ;;  %v1076_v17 = vld [vmem:[#allocation2 + $0x118] sm:$0xff] }
 0x134   : > { %2586 = vmatpush1.bf16.msra.mxu1 %v2585_v45  ;;  %v1094_v45 = vld [vmem:[#allocation2 + $0x1a8] sm:$0xff] }
 0x135   : > { %2588 = vmatprep.subr.bf16.mxu1 %v2587_v50  ;;  %v1091_v50 = vld [vmem:[#allocation2 + $0x190] sm:$0xff]  ;;  %v2543_v52 = vpack.c.bf16 %v1094_v45, %v1090_v44  ;;  %v1134_v44 = vld [vmem:[#allocation2 + $0x2e8] sm:$0xff]  ;;  %v2625_v45 = vpack.c.bf16 %v1127_v38, %v1123_v37  ;;  %v2579_v38 = vpack.c.bf16 %v1166_v32, %v1162_v31 }
 0x136   : > { %v1167_v37 = vld [vmem:[#allocation2 + $0x3f0] sm:$0xff] }
 0x138   : > { %2590 = vmatpush1.bf16.msra.mxu1 %v2589_v58  ;;  %v2609_v58 = vpack.c.bf16 %v1095_v51, %v1091_v50  ;;  %v1135_v50 = vld [vmem:[#allocation2 + $0x2f0] sm:$0xff]  ;;  %v594_v51 = vld [vmem:[%s3183_s24 + $0x8] sm:$0xff] }
 0x139   : > { %2592 = vmatprep.subr.bf16.mxu1 %v2591_v63  ;;  %v1103_v63 = vld [vmem:[#allocation2 + $0x1f0] sm:$0xff]  ;;  %1233 = vmatprep.mubr.f32.mxu0 %v594_v51 }
 0x13a   : > { %1310 = vmatprep.mubr.f32.mxu1 %v594_v51 }
 0x13c   : > { %2594 = vmatpush1.bf16.msra.mxu1 %v2593_v8  ;;  %v2613_v8 = vpack.c.bf16 %v1103_v63, %v1099_v62  ;;  %v1139_v62 = vld [vmem:[#allocation2 + $0x310] sm:$0xff] }
 0x13d   : > { %2596 = vmatprep.subr.bf16.mxu1 %v2595_v11  ;;  %v1105_v11 = vld [vmem:[#allocation2 + $0x200] sm:$0xff]  ;;  %v1143_v63 = vld [vmem:[#allocation2 + $0x330] sm:$0xff] }
 0x140   : > { %2598 = vmatpush1.bf16.msra.mxu1 %v2597_v21  ;;  %v2553_v21 = vpack.c.bf16 %v1109_v15, %v1105_v11  ;;  %v1145_v11 = vld [vmem:[#allocation2 + $0x340] sm:$0xff] }
 0x141   : > { %v1149_v15 = vld [vmem:[#allocation2 + $0x360] sm:$0xff] }
 0x206   : > { %v916_v23 = vpop.f32.mrb[0].mxu1 }
 0x207   : > { %v3160_v24 = vsel %vm920_vm3, %v916_v23, -1e+09  ;;  %v2473_v25 = vpop.f32.mrb[1].mxu1  ;;  %v2599_v23 = vpack.c.bf16 %v1080_v18, %v1076_v17  ;;  %v1120_v17 = vld [vmem:[#allocation2 + $0x278] sm:$0xff]  ;;  %v1114_v18 = vld [vmem:[#allocation2 + $0x248] sm:$0xff] }
 0x208   : > { %v925_v26 = vsel %vm924_vm4, %v3160_v24, -inf  ;;  %v1073_v25 = vld [vmem:[#allocation2 + $0x100] sm:$0xff]  ;;  %v2619_v22 = vpack.c.bf16 %v1120_v17, %v1116_v16  ;;  %v1156_v16 = vld [vmem:[#allocation2 + $0x398] sm:$0xff] }
 0x209   : > { %926 = vmax.xlane.f32.xlu0 %v925_v26  ;;  %v1075_v26 = vld [vmem:[#allocation2 + $0x110] sm:$0xff]  ;;  %2600 = vmatprep.subr.bf16.mxu1 %v2599_v23  ;;  %v2537_v35 = vpack.c.bf16 %v1077_v29, %v1073_v25  ;;  %v1113_v23 = vld [vmem:[#allocation2 + $0x240] sm:$0xff]  ;;  %v1124_v29 = vld [vmem:[#allocation2 + $0x298] sm:$0xff] }
 0x20a   : > { %v2601_v34 = vpack.c.bf16 %v1079_v27, %v1075_v26  ;;  %v1115_v25 = vld [vmem:[#allocation2 + $0x250] sm:$0xff]  ;;  %v2555_v27 = vpack.c.bf16 %v1118_v19, %v1114_v18  ;;  %v1160_v17 = vld [vmem:[#allocation2 + $0x3b8] sm:$0xff]  ;;  %v1154_v18 = vld [vmem:[#allocation2 + $0x388] sm:$0xff] }
 0x20b   : > { %2538 = vmatpush1.bf16.msra.mxu0 %v2537_v35  ;;  %v1119_v26 = vld [vmem:[#allocation2 + $0x270] sm:$0xff]  ;;  %v2623_v35 = vpack.c.bf16 %v1128_v30, %v1124_v29  ;;  %v1158_v19 = vld [vmem:[#allocation2 + $0x3a8] sm:$0xff]  ;;  %v1164_v29 = vld [vmem:[#allocation2 + $0x3d8] sm:$0xff] }
 0x20c   : > { %2602 = vmatpush1.bf16.msra.mxu1 %v2601_v34  ;;  %2540 = vmatprep.subr.bf16.mxu0 %v2539_v40  ;;  %v2621_v33 = vpack.c.bf16 %v1119_v26, %v1115_v25  ;;  %v2557_v34 = vpack.c.bf16 %v1117_v28, %v1113_v23  ;;  %v1125_v40 = vld [vmem:[#allocation2 + $0x2a0] sm:$0xff]  ;;  %v1155_v25 = vld [vmem:[#allocation2 + $0x390] sm:$0xff]  ;;  %v1168_v30 = vld [vmem:[#allocation2 + $0x3f8] sm:$0xff] }
 0x20d   : > { %2604 = vmatprep.subr.bf16.mxu1 %v2603_v36  ;;  %v1121_v36 = vld [vmem:[#allocation2 + $0x280] sm:$0xff]  ;;  %v1159_v26 = vld [vmem:[#allocation2 + $0x3b0] sm:$0xff] }
 0x20e   : > { %v1153_v23 = vld [vmem:[#allocation2 + $0x380] sm:$0xff] }
 0x20f   : > { %2542 = vmatpush1.bf16.msra.mxu0 %v2541_v47  ;;  %v2561_v47 = vpack.c.bf16 %v1125_v40, %v1121_v36  ;;  %v1157_v28 = vld [vmem:[#allocation2 + $0x3a0] sm:$0xff]  ;;  %v1163_v36 = vld [vmem:[#allocation2 + $0x3d0] sm:$0xff] }
 0x210   : > { %2606 = vmatpush1.bf16.msra.mxu1 %v2605_v46  ;;  %2544 = vmatprep.subr.bf16.mxu0 %v2543_v52  ;;  %v1129_v46 = vld [vmem:[#allocation2 + $0x2c0] sm:$0xff]  ;;  %v2563_v52 = vpack.c.bf16 %v1134_v44, %v1130_v43  ;;  %v596_v44 = vld [vmem:[%s3183_s24 + $0x18] sm:$0xff] }
 0x211   : > { %2608 = vmatprep.subr.bf16.mxu1 %v2607_v48  ;;  %v2627_v48 = vpack.c.bf16 %v1136_v42, %v1132_v41  ;;  %v1165_v40 = vld [vmem:[#allocation2 + $0x3e0] sm:$0xff]  ;;  %v2645_v41 = vpack.c.bf16 %v1167_v37, %v1163_v36 }
 0x212   : > { %v593_v43 = vld [vmem:[%s3183_s24] sm:$0xff] }
 0x213   : > { %2546 = vmatpush1.bf16.msra.mxu0 %v2545_v59  ;;  %v2565_v59 = vpack.c.bf16 %v1133_v53, %v1129_v46  ;;  %v922_v46 = vlaneseq  ;;  %v3199_v53 = vpop.f32.mrb[4].mxu0 }
 0x214   : > { %2610 = vmatpush1.bf16.msra.mxu1 %v2609_v58  ;;  %2548 = vmatprep.subr.bf16.mxu0 %v2547_v2  ;;  %v2629_v58 = vpack.c.bf16 %v1135_v50, %v1131_v49  ;;  %v2567_v2 = vpack.c.bf16 %v1142_v57, %v1138_v56 }
 0x215   : > { %2612 = vmatprep.subr.bf16.mxu1 %v2611_v60  ;;  %v2631_v60 = vpack.c.bf16 %v1144_v55, %v1140_v54  ;;  %v2466_v54 = vpop.f32.mrb[5].mxu0 }
 0x217   : > { %2550 = vmatpush1.bf16.msra.mxu0 %v2549_v9  ;;  %v2569_v9 = vpack.c.bf16 %v1141_v3, %v1137_v61 }
 0x218   : > { %2614 = vmatpush1.bf16.msra.mxu1 %v2613_v8  ;;  %2552 = vmatprep.subr.bf16.mxu0 %v2551_v14  ;;  %v2633_v8 = vpack.c.bf16 %v1143_v63, %v1139_v62  ;;  %v2571_v14 = vpack.c.bf16 %v1150_v7, %v1146_v6 }
 0x219   : > { %2616 = vmatprep.subr.bf16.mxu1 %v2615_v10  ;;  %v2635_v10 = vpack.c.bf16 %v1152_v5, %v1148_v4 }
 0x21b   : > { %2554 = vmatpush1.bf16.msra.mxu0 %v2553_v21  ;;  %v2573_v21 = vpack.c.bf16 %v1149_v15, %v1145_v11 }
 0x21c   : > { %2618 = vmatpush1.bf16.msra.mxu1 %v2617_v20  ;;  %2556 = vmatprep.subr.bf16.mxu0 %v2555_v27  ;;  %v2637_v20 = vpack.c.bf16 %v1151_v13, %v1147_v12  ;;  %v2575_v27 = vpack.c.bf16 %v1158_v19, %v1154_v18  ;;  %v3214_v18 = vld [vmem:[%s3647_s9] sm:$0xf] }
 0x21d   : > { %2620 = vmatprep.subr.bf16.mxu1 %v2619_v22  ;;  %v2639_v22 = vpack.c.bf16 %v1160_v17, %v1156_v16  ;;  %v3209_v17 = vshrl.u32 %v922_v46, 7 }
 0x21f   : > { %2558 = vmatpush1.bf16.msra.mxu0 %v2557_v34  ;;  %v2577_v34 = vpack.c.bf16 %v1157_v28, %v1153_v23  ;;  %v1335_v19 = vsub.s32 2, %v3209_v17 }
 0x220   : > { %2622 = vmatpush1.bf16.msra.mxu1 %v2621_v33  ;;  %2560 = vmatprep.subr.bf16.mxu0 %v2559_v39  ;;  %v2641_v33 = vpack.c.bf16 %v1159_v26, %v1155_v25  ;;  %v1161_v39 = vld [vmem:[#allocation2 + $0x3c0] sm:$0xff] }
 0x221   : > { %2624 = vmatprep.subr.bf16.mxu1 %v2623_v35  ;;  %v2643_v35 = vpack.c.bf16 %v1168_v30, %v1164_v29  ;;  %v2581_v42 = vpack.c.bf16 %v1165_v40, %v1161_v39 }
 0x223   : > { %2562 = vmatpush1.bf16.msra.mxu0 %v2561_v47  ;;  %v3191_v47 = vand.u32 127, %v922_v46 }
 0x224   : > { %2626 = vmatpush1.bf16.msra.mxu1 %v2625_v45  ;;  %2564 = vmatprep.subr.bf16.mxu0 %v2563_v52  ;;  %v595_v45 = vld [vmem:[%s3183_s24 + $0x10] sm:$0xff] }
 0x225   : > { %2628 = vmatprep.subr.bf16.mxu1 %v2627_v48 }
 0x227   : > { %2566 = vmatpush1.bf16.msra.mxu0 %v2565_v59 }
 0x228   : > { %2630 = vmatpush1.bf16.msra.mxu1 %v2629_v58  ;;  %2568 = vmatprep.subr.bf16.mxu0 %v2567_v2 }
 0x229   : > { %2632 = vmatprep.subr.bf16.mxu1 %v2631_v60 }
 0x22b   : > { %2570 = vmatpush1.bf16.msra.mxu0 %v2569_v9 }
 0x22c   : > { %2634 = vmatpush1.bf16.msra.mxu1 %v2633_v8  ;;  %2572 = vmatprep.subr.bf16.mxu0 %v2571_v14 }
 0x22d   : > { %2636 = vmatprep.subr.bf16.mxu1 %v2635_v10 }
 0x22f   : > { %2574 = vmatpush1.bf16.msra.mxu0 %v2573_v21 }
 0x230   : > { %2638 = vmatpush1.bf16.msra.mxu1 %v2637_v20  ;;  %2576 = vmatprep.subr.bf16.mxu0 %v2575_v27  ;;  %v1339_v20 = vsub.s32 3, %v3209_v17 }
 0x231   : > { %2640 = vmatprep.subr.bf16.mxu1 %v2639_v22 }
 0x232   : > { %v3222_v21 = vrot.slane %v3214_v18, %v1339_v20  ;;  %v1577_v20 = vld [vmem:[%s3648_s10 + $0x98] sm:$0xff] }
 0x233   : > { %2578 = vmatpush1.bf16.msra.mxu0 %v2577_v34 }
 0x234   : > { %2642 = vmatpush1.bf16.msra.mxu1 %v2641_v33  ;;  %2580 = vmatprep.subr.bf16.mxu0 %v2579_v38 }
 0x235   : > { %2644 = vmatprep.subr.bf16.mxu1 %v2643_v35 }
 0x237   : > { %2582 = vmatpush1.bf16.msra.mxu0 %v2581_v42 }
 0x238   : > { %2646 = vmatpush1.bf16.msra.mxu1 %v2645_v41 }
 0x23a   : > { %1234 = vmatmul.mubr.f32.vlgmr.msra.gmra.mrb[6].mxu0 %v593_v43 }
 0x23b   : > { %1311 = vmatmul.mubr.f32.vlgmr.msra.gmra.mrb[2].mxu1 %v593_v43  ;;  %1239 = vmatprep.mubr.f32.mxu0 %v596_v44 }
 0x23c   : > { %1316 = vmatprep.mubr.f32.mxu1 %v596_v44 }
 0x23e   : > { %1240 = vmatmul.mubr.f32.gmra.mrb[8].mxu0 %v595_v45 }
 0x23f   : > { %1317 = vmatmul.mubr.f32.gmra.mrb[4].mxu1 %v595_v45  ;;  %1421 = vmatprep.mubr.f32.mxu0 %v2921_v1 }
 0x240   : > { %1510 = vmatprep.mubr.f32.mxu1 %v2921_v1 }
 0x296   : > { %v3193_v48 = vpop.xlane.xlu0 %926 }
 0x297   : > { %vm928_vm5 = vcmp.eq.f32.partialorder %v3160_v24, %v3193_v48 }
 0x298   : > { %v929_v49 = vsel %vm928_vm5, %v3191_v47, 16 }
 0x299   : > { %v930_v50 = vsel %vm924_vm4, %v929_v49, 2147483647 }
 0x29a   : > { %v932_v51 = vshra.s32 %v930_v50, 16  ;;  %v931_v55 = vand.u32 65535, %v930_v50 }
 0x29c   : > { %v934_v52 = vcvt.s32.f32 %v932_v51  ;;  %v933_v57 = vcvt.s32.f32 %v931_v55 }
 0x29e   : > { %935 = vmin.xlane.f32.xlu0 %v934_v52 }
 0x30d   : > { %v1235_v60 = vpop.f32.mrb[6].mxu0 }
 0x30e   : > { %v1312_v59 = vpop.f32.mrb[2].mxu1  ;;  %v1237_v62 = vpop.f32.mrb[7].mxu0 }
 0x30f   : > { %v1314_v61 = vpop.f32.mrb[3].mxu1 }
 0x311   : > { %v1241_v2 = vpop.f32.mrb[8].mxu0 }
 0x312   : > { %v1318_v63 = vpop.f32.mrb[4].mxu1  ;;  %v2649_v4 = vpack.c.bf16 %v1241_v2, %v1235_v60  ;;  %v1243_v5 = vpop.f32.mrb[9].mxu0 }
 0x313   : > { %v2653_v3 = vpack.c.bf16 %v1318_v63, %v1312_v59  ;;  %v1320_v6 = vpop.f32.mrb[5].mxu1  ;;  %v2647_v7 = vpack.c.bf16 %v1243_v5, %v1237_v62 }
 0x314   : > { %v2651_v8 = vpack.c.bf16 %v1320_v6, %v1314_v61 }
 0x315   : > { %2648 = vmatprep.subr.bf16.mxu0 %v2647_v7 }
 0x316   : > { %2652 = vmatprep.subr.bf16.mxu1 %v2651_v8  ;;  %2650 = vmatpush1.bf16.msra.mxu0 %v2649_v4 }
 0x317   : > { %2654 = vmatpush1.bf16.msra.mxu1 %v2653_v3 }
 0x32b   : > { %v936_v56 = vpop.xlane.xlu0 %935 }
 0x32c   : > { %vm937_vm6 = vcmp.eq.f32.partialorder %v934_v52, %v936_v56  ;;  %v942_v9 = vcvt.f32.s32 %v936_v56 }
 0x32d   : > { %v938_v58 = vsel %vm937_vm6, %v933_v57, inf  ;;  %vm1546_vm6 = vcmask 523264  }
 0x32e   : > { %939 = vmin.xlane.f32.xlu1 %v938_v58  ;;  %v943_v11 = vshll.u32 %v942_v9, 16 }
 0x3bb   : > { %v940_v10 = vpop.xlane.xlu1 %939 }
 0x3bc   : > { %v941_v12 = vcvt.f32.s32 %v940_v10 }
 0x3be   : > { %v944_v13 = vadd.s32 %v943_v11, %v941_v12  ;;  %v2283_v11 = vld [vmem:[%s3645_s7] ss:$0 sm:$0xff] }
 0x3bf   : > { %v3273_v12 = vadd.f32 %v2283_v11, %v3199_v53  ;;  %v1559_v53 = vld [vmem:[%s3648_s10 + $0x8] sm:$0xff]  ;;  %v1568_v11 = vld [vmem:[%s3648_s10 + $0x50] sm:$0xff] }
 0x3c0   : > { %vm945_vm7 = vcmp.eq.s32.totalorder %v3191_v47, %v944_v13  ;;  %v1574_v13 = vld [vmem:[%s3648_s10 + $0x80] sm:$0xff] }
 0x3c1   : > { %v2288_v14 = vsel %vm945_vm7, 1.0, %v2921_v1 }
 0x3c2   : > { %2292 = vmatmul.mubr.msk.f32.vlgmr.msra.gmra.mrb[10].mxu0 %vm924_vm4, %v2288_v14  ;;  %2296 = vmatmul.mubr.msk.f32.vlgmr.msra.gmra.mrb[6].mxu1 %vm924_vm4, %v2288_v14  ;;  %vm948_vm8 = vcmp.gt.f32.partialorder %v2288_v14, 0.5  ;;  %v1575_v14 = vld [vmem:[%s3648_s10 + $0x88] sm:$0xff] }
 0x3c3   : > { %v949_v15 = vsel %vm948_vm8, -inf, %v3160_v24  ;;  %1427 = vmatprep.mubr.f32.mxu0 %v2921_v1  ;;  %1516 = vmatprep.mubr.f32.mxu1 %v2921_v1  ;;  %v3219_v24 = vrot.slane %v3214_v18, %v1335_v19  ;;  %v1576_v19 = vld [vmem:[%s3648_s10 + $0x90] sm:$0xff]  ;;  %vm1548_vm8 = vcmask 785408  }
 0x3c4   : > { %v950_v16 = vsel %vm924_vm4, %v949_v15, -inf }
 0x3c5   : > { %951 = vmax.xlane.f32.xlu1 %v950_v16  ;;  %v2655_v16 = vpack.c.bf16 %v1575_v14, %v1574_v13  ;;  %v1586_v13 = vld [vmem:[%s3648_s10 + $0xe0] sm:$0xff]  ;;  %v1587_v14 = vld [vmem:[%s3648_s10 + $0xe8] sm:$0xff] }
 0x3c7   : > { %2656 = vmatprep.subr.bf16.mxu0 %v2655_v16  ;;  %v1570_v16 = vld [vmem:[%s3648_s10 + $0x60] sm:$0xff] }
 0x452   : > { %v3224_v22 = vpop.xlane.xlu1 %951 }
 0x453   : > { %vm953_vm9 = vcmp.eq.f32.partialorder %v949_v15, %v3224_v22 }
 0x454   : > { %v954_v23 = vsel %vm953_vm9, %v3191_v47, 16  ;;  %vm1023_vm9 = vcmask 7168  }
 0x455   : > { %v955_v25 = vsel %vm924_vm4, %v954_v23, 2147483647 }
 0x456   : > { %v957_v26 = vshra.s32 %v955_v25, 16  ;;  %v956_v32 = vand.u32 65535, %v955_v25  ;;  %v2659_v25 = vpack.c.bf16 %v1577_v20, %v1576_v19  ;;  %v1588_v20 = vld [vmem:[%s3648_s10 + $0xf0] sm:$0xff] }
 0x458   : > { %v959_v27 = vcvt.s32.f32 %v957_v26  ;;  %v958_v34 = vcvt.s32.f32 %v956_v32  ;;  %v1560_v26 = vld [vmem:[%s3648_s10 + $0x10] sm:$0xff]  ;;  %v1578_v32 = vld [vmem:[%s3648_s10 + $0xa0] sm:$0xff] }
 0x45a   : > { %960 = vmin.xlane.f32.xlu0 %v959_v27 }
 0x495   : > { %v3229_v28 = vpop.f32.mrb[10].mxu0  ;;  %v3231_v29 = vpop.f32.mrb[6].mxu1 }
 0x496   : > { %v3233_v30 = vpop.f32.mrb[11].mxu0  ;;  %v3235_v31 = vpop.f32.mrb[7].mxu1 }
 0x4e7   : > { %v961_v33 = vpop.xlane.xlu0 %960 }
 0x4e8   : > { %vm962_vm10 = vcmp.eq.f32.partialorder %v959_v27, %v961_v33  ;;  %v967_v36 = vcvt.f32.s32 %v961_v33  ;;  %v1561_v27 = vld [vmem:[%s3648_s10 + $0x18] sm:$0xff]  ;;  %v1579_v33 = vld [vmem:[%s3648_s10 + $0xa8] sm:$0xff] }
 0x4e9   : > { %v963_v35 = vsel %vm962_vm10, %v958_v34, inf  ;;  %v2661_v34 = vpack.c.bf16 %v1561_v27, %v1560_v26  ;;  %v1572_v26 = vld [vmem:[%s3648_s10 + $0x70] sm:$0xff]  ;;  %v1573_v27 = vld [vmem:[%s3648_s10 + $0x78] sm:$0xff]  ;;  %vm1025_vm10 = vcmask 15360  }
 0x4ea   : > { %964 = vmin.xlane.f32.xlu1 %v963_v35  ;;  %v968_v38 = vshll.u32 %v967_v36, 16  ;;  %v2663_v35 = vpack.c.bf16 %v1579_v33, %v1578_v32  ;;  %v1562_v36 = vld [vmem:[%s3648_s10 + $0x20] sm:$0xff]  ;;  %v2685_v32 = vpack.c.bf16 %v1573_v27, %v1572_v26 }
 0x577   : > { %v965_v37 = vpop.xlane.xlu1 %964 }
 0x578   : > { %v966_v39 = vcvt.f32.s32 %v965_v37  ;;  %v1563_v37 = vld [vmem:[%s3648_s10 + $0x28] sm:$0xff] }
 0x57a   : > { %v969_v40 = vadd.s32 %v968_v38, %v966_v39  ;;  %v1580_v38 = vld [vmem:[%s3648_s10 + $0xb0] sm:$0xff]  ;;  %v1581_v39 = vld [vmem:[%s3648_s10 + $0xb8] sm:$0xff] }
 0x57c   : > { %vm970_vm11 = vcmp.eq.s32.totalorder %v3191_v47, %v969_v40  ;;  %v2665_v40 = vpack.c.bf16 %v1563_v37, %v1562_v36 }
 0x57d   : > { %v2289_v41 = vsel %vm970_vm11, 1.0, %v2921_v1  ;;  %vm1027_vm11 = vcmask 23552  }
 0x57e   : > { %2293 = vmatmul.mubr.msk.f32.gmra.mrb[12].mxu0 %vm924_vm4, %v2289_v41  ;;  %2297 = vmatmul.mubr.msk.f32.gmra.mrb[8].mxu1 %vm924_vm4, %v2289_v41  ;;  %vm973_vm12 = vcmp.gt.f32.partialorder %v2289_v41, 0.5  ;;  %v2667_v41 = vpack.c.bf16 %v1581_v39, %v1580_v38 }
 0x57f   : > { %v974_v42 = vsel %vm973_vm12, -inf, %v949_v15  ;;  %1433 = vmatprep.mubr.f32.mxu0 %v2921_v1  ;;  %1522 = vmatprep.mubr.f32.mxu1 %v2921_v1  ;;  %v1558_v15 = vld [vmem:[%s3648_s10] sm:$0xff]  ;;  %vm1029_vm12 = vcmask 31744  }
 0x580   : > { %v975_v43 = vsel %vm924_vm4, %v974_v42, -inf  ;;  %v2657_v23 = vpack.c.bf16 %v1559_v53, %v1558_v15  ;;  %v2679_v15 = vpack.c.bf16 %v1587_v14, %v1586_v13  ;;  %v1571_v53 = vld [vmem:[%s3648_s10 + $0x68] sm:$0xff]  ;;  %v1024_v14 = vsel %vm1023_vm9, %v3193_v48, %v3224_v22 }
 0x581   : > { %976 = vmax.xlane.f32.xlu0 %v975_v43  ;;  %v1565_v43 = vld [vmem:[%s3648_s10 + $0x38] sm:$0xff]  ;;  %v2681_v19 = vpack.c.bf16 %v1571_v53, %v1570_v16 }
 0x582   : > { %2658 = vmatpush3.bf16.msra.mxu0 %v2657_v23  ;;  %v1589_v23 = vld [vmem:[%s3648_s10 + $0xf8] sm:$0xff] }
 0x583   : > { %2660 = vmatprep.subr.bf16.mxu0 %v2659_v25  ;;  %v2683_v25 = vpack.c.bf16 %v1589_v23, %v1588_v20 }
 0x586   : > { %2662 = vmatpush3.bf16.msra.mxu0 %v2661_v34  ;;  %v1327_v34 = vsub.s32 0, %v3209_v17 }
 0x587   : > { %2664 = vmatprep.subr.bf16.mxu0 %v2663_v35  ;;  %v1331_v35 = vsub.s32 1, %v3209_v17 }
 0x58a   : > { %2666 = vmatpush3.bf16.msra.mxu0 %v2665_v40  ;;  %v1328_v40 = vrot.slane %v3214_v18, %v1327_v34 }
 0x58b   : > { %2668 = vmatprep.subr.bf16.mxu0 %v2667_v41  ;;  %v1332_v41 = vrot.slane %v3214_v18, %v1331_v35 }
 0x58c   : > { %v1424_v17 = vadd.f32 %v3229_v28, %v1328_v40 }
 0x60e   : > { %v3244_v44 = vpop.xlane.xlu0 %976 }
 0x60f   : > { %vm978_vm13 = vcmp.eq.f32.partialorder %v974_v42, %v3244_v44 }
 0x610   : > { %v979_v45 = vsel %vm978_vm13, %v3191_v47, 16 }
 0x611   : > { %v980_v46 = vsel %vm924_vm4, %v979_v45, 2147483647  ;;  %v1582_v45 = vld [vmem:[%s3648_s10 + $0xc0] sm:$0xff] }
 0x612   : > { %v982_v49 = vshra.s32 %v980_v46, 16  ;;  %v981_v56 = vand.u32 65535, %v980_v46  ;;  %v1583_v46 = vld [vmem:[%s3648_s10 + $0xc8] sm:$0xff] }
 0x614   : > { %v984_v50 = vcvt.s32.f32 %v982_v49  ;;  %v983_v58 = vcvt.s32.f32 %v981_v56  ;;  %v1566_v56 = vld [vmem:[%s3648_s10 + $0x40] sm:$0xff] }
 0x616   : > { %985 = vmin.xlane.f32.xlu1 %v984_v50 }
 0x651   : > { %v3249_v51 = vpop.f32.mrb[12].mxu0  ;;  %v3251_v52 = vpop.f32.mrb[8].mxu1 }
 0x652   : > { %v3253_v54 = vpop.f32.mrb[13].mxu0  ;;  %v3255_v55 = vpop.f32.mrb[9].mxu1 }
 0x6a3   : > { %v986_v57 = vpop.xlane.xlu1 %985 }
 0x6a4   : > { %vm987_vm14 = vcmp.eq.f32.partialorder %v984_v50, %v986_v57  ;;  %v992_v60 = vcvt.f32.s32 %v986_v57  ;;  %v2671_v50 = vpack.c.bf16 %v1583_v46, %v1582_v45  ;;  %v1567_v57 = vld [vmem:[%s3648_s10 + $0x48] sm:$0xff] }
 0x6a5   : > { %v988_v59 = vsel %vm987_vm14, %v983_v58, inf  ;;  %v2673_v58 = vpack.c.bf16 %v1567_v57, %v1566_v56  ;;  %v1432_v57 = vadd.f32 %v3253_v54, %v1332_v41 }
 0x6a6   : > { %989 = vmin.xlane.f32.xlu0 %v988_v59  ;;  %v993_v62 = vshll.u32 %v992_v60, 16 }
 0x733   : > { %v990_v61 = vpop.xlane.xlu0 %989 }
 0x734   : > { %v991_v63 = vcvt.f32.s32 %v990_v61 }
 0x736   : > { %v994_v2 = vadd.s32 %v993_v62, %v991_v63 }
 0x738   : > { %vm995_vm15 = vcmp.eq.s32.totalorder %v3191_v47, %v994_v2 }
 0x739   : > { %v2290_v3 = vsel %vm995_vm15, 1.0, %v2921_v1 }
 0x73a   : > { %2294 = vmatmul.mubr.msk.f32.gmra.mrb[14].mxu0 %vm924_vm4, %v2290_v3  ;;  %2298 = vmatmul.mubr.msk.f32.gmra.mrb[10].mxu1 %vm924_vm4, %v2290_v3  ;;  %vm998_vm2 = vcmp.gt.f32.partialorder %v2290_v3, 0.5 }
 0x73b   : > { %v999_v4 = vsel %vm998_vm2, -inf, %v974_v42  ;;  %1439 = vmatprep.mubr.f32.mxu0 %v2921_v1  ;;  %1528 = vmatprep.mubr.f32.mxu1 %v2921_v1  ;;  %v1564_v42 = vld [vmem:[%s3648_s10 + $0x30] sm:$0xff] }
 0x73c   : > { %v1000_v5 = vsel %vm924_vm4, %v999_v4, -inf  ;;  %v2669_v49 = vpack.c.bf16 %v1565_v43, %v1564_v42 }
 0x73d   : > { %1001 = vmax.xlane.f32.xlu1 %v1000_v5  ;;  %v1584_v5 = vld [vmem:[%s3648_s10 + $0xd0] sm:$0xff] }
 0x73e   : > { %2670 = vmatpush3.bf16.msra.mxu0 %v2669_v49  ;;  %v1426_v49 = vadd.f32 %v3233_v30, %v1332_v41 }
 0x73f   : > { %2672 = vmatprep.subr.bf16.mxu0 %v2671_v50 }
 0x742   : > { %2674 = vmatpush3.bf16.msra.mxu0 %v2673_v58 }
 0x7ca   : > { %v3264_v6 = vpop.xlane.xlu1 %1001 }
 0x7cb   : > { %vm1003_vm3 = vcmp.eq.f32.partialorder %v999_v4, %v3264_v6 }
 0x7cc   : > { %v1004_v7 = vsel %vm1003_vm3, %v3191_v47, 16 }
 0x7cd   : > { %v1005_v8 = vsel %vm924_vm4, %v1004_v7, 2147483647  ;;  %v1585_v7 = vld [vmem:[%s3648_s10 + $0xd8] sm:$0xff] }
 0x7ce   : > { %v1007_v9 = vshra.s32 %v1005_v8, 16  ;;  %v1006_v63 = vand.u32 65535, %v1005_v8  ;;  %v1569_v8 = vld [vmem:[%s3648_s10 + $0x58] sm:$0xff] }
 0x7d0   : > { %v1009_v10 = vcvt.s32.f32 %v1007_v9  ;;  %v1008_v3 = vcvt.s32.f32 %v1006_v63  ;;  %v2675_v9 = vpack.c.bf16 %v1585_v7, %v1584_v5 }
 0x7d2   : > { %1010 = vmin.xlane.f32.xlu0 %v1009_v10  ;;  %2676 = vmatprep.subr.bf16.mxu0 %v2675_v9 }
 0x7e8   : > { %1536 = vrot.lane.b32.xlu0 %v3273_v12, %s2922_s19 }
 0x80d   : > { %v3336_v59 = vpop.f32.mrb[14].mxu0  ;;  %v3338_v60 = vpop.f32.mrb[10].mxu1 }
 0x80e   : > { %v3340_v61 = vpop.f32.mrb[15].mxu0  ;;  %v3342_v62 = vpop.f32.mrb[11].mxu1  ;;  %v1436_v28 = vadd.f32 %v3336_v59, %v1328_v40 }
 0x85f   : > { %v1011_v2 = vpop.xlane.xlu0 %1010 }
 0x860   : > { %vm1012_vm5 = vcmp.eq.f32.partialorder %v1009_v10, %v1011_v2  ;;  %v2677_v10 = vpack.c.bf16 %v1569_v8, %v1568_v11  ;;  %v1017_v33 = vcvt.f32.s32 %v1011_v2  ;;  %v1430_v2 = vadd.f32 %v3249_v51, %v1328_v40 }
 0x861   : > { %v1013_v4 = vsel %vm1012_vm5, %v1008_v3, inf }
 0x862   : > { %1014 = vmin.xlane.f32.xlu1 %v1013_v4  ;;  %2678 = vmatpush3.bf16.msra.mxu0 %v2677_v10  ;;  %v1018_v37 = vshll.u32 %v1017_v33, 16 }
 0x863   : > { %2680 = vmatprep.subr.bf16.mxu0 %v2679_v15  ;;  %v1537_v42 = vpop.permute.xlu0 %1536  ;;  %v1026_v15 = vsel %vm1025_vm10, %v1024_v14, %v3244_v44  ;;  %v1699_v44 = vld [vmem:[%s3650_s12] sm:$0xff] }
 0x864   : > { %v1545_v46 = vsel %vm601_vm1, %v3273_v12, %v1537_v42  ;;  %v1028_v20 = vsel %vm1027_vm11, %v1026_v15, %v3264_v6  ;;  %v1700_v6 = vld [vmem:[%s3650_s12 + $0x8] sm:$0xff] }
 0x865   : > { %v1030_v27 = vsel %vm1029_vm12, %v1028_v20, -inf  ;;  %v2687_v33 = vpack.c.bf16 %v1700_v6, %v1699_v44 }
 0x866   : > { %2682 = vmatpush3.bf16.msra.mxu0 %v2681_v19 }
 0x867   : > { %2684 = vmatprep.subr.bf16.mxu0 %v2683_v25  ;;  %2688 = vmatprep.subr.bf16.mxu1 %v2687_v33 }
 0x868   : > { %2690 = vmatpush3.bf16.msra.mxu1 %v2687_v33  ;;  %v1921_v33 = vld [vmem:[%s3651_s13 + $0x10] sm:$0xff] }
 0x86a   : > { %2686 = vmatpush3.bf16.msra.mxu0 %v2685_v32 }
 0x86b   : > { %2727 = vmatprep.subr.bf16.mxu0 %v2919_v0 }
 0x873   : > { %1539 = vrot.lane.b32.xlu1 %v3273_v12, %s2923_s23  ;;  %s2311_s23 = sshll.u32 %s3036_s25, 7  ;;  %s2929_s25 = smov [#allocation5]  }
 0x874   : > { %s3595_s8 = scalar_lea.hbm %s3654_s16, %s2311_s23  ;;  %s2852_s24 = sshll.u32 %s2929_s25, 4  ;;  %s2853_s24 = int_to_ptr.vmem [resolvable:$false] %s2852_s24 }
 0x875   : > { %p2855_p2 = scmp.lt.s32.totalorder %s3597_s27, %s2853_s24 }
 0x877   : > { %1542 = vrot.lane.b32.xlu1 %v3273_v12, %s2924_s21  ;;  %v1438_v12 = vadd.f32 %v3340_v61, %v1332_v41  ;;  %s2854_s21 = scalar_lea.vmem %s2853_s24, 256 }
 0x878   : > { %p2856_p3 = scmp.lt.s32.totalorder %s2854_s21, %s2848_s4 }
 0x87a   : > { %p2857_p4 = por %p2856_p3, %p2855_p2 }
 0x87c   : > { %p2858_p7 = pnand %p2857_p4, %p2851_p12 }
 0x8ef   : > { %v1015_v36 = vpop.xlane.xlu1 %1014 }
 0x8f0   : > { %v1016_v38 = vcvt.f32.s32 %v1015_v36 }
 0x8f2   : > { %v1019_v39 = vadd.s32 %v1018_v37, %v1016_v38 }
 0x8f3   : > { %v1540_v43 = vpop.permute.xlu1 %1539 }
 0x8f4   : > { %vm1020_vm7 = vcmp.eq.s32.totalorder %v3191_v47, %v1019_v39  ;;  %v1547_v18 = vsel %vm1546_vm6, %v1545_v46, %v1540_v43 }
 0x8f5   : > { %v2291_v45 = vsel %vm1020_vm7, 1.0, %v2921_v1 }
 0x8f6   : > { %2295 = vmatmul.mubr.msk.f32.gmra.mrb[16].mxu0 %vm924_vm4, %v2291_v45  ;;  %2299 = vmatmul.mubr.msk.f32.gmra.mrb[12].mxu1 %vm924_vm4, %v2291_v45 }
 0x8f7   : > { %v1543_v50 = vpop.permute.xlu1 %1542 }
 0x8f8   : > { %v1549_v56 = vsel %vm1548_vm8, %v1547_v18, %v1543_v50 }
 0x8f9   : > { %v1551_v47 = vmul.f32 %v1549_v56, %v1426_v49  ;;  %v1550_v58 = vmul.f32 %v1549_v56, %v1424_v17  ;;  %v1553_v63 = vmul.f32 %v1549_v56, %v1432_v57  ;;  %v1552_v3 = vmul.f32 %v1549_v56, %v1430_v2 }
 0x8fa   : > { %v1555_v4 = vmul.f32 %v1549_v56, %v1438_v12  ;;  %v1554_v30 = vmul.f32 %v1549_v56, %v1436_v28  ;;  %v2925_v2 = vmov 1   ;;  %v2926_v12 = vmov 0  }
 0x8fb   : > { %1654 = vmatprep.mubr.f32.mxu0 %v1551_v47  ;;  %2796 = vset.pattern.permute.xlu0 %v2925_v2 }
 0x8fc   : > { %1655 = vmatmul.mubr.f32.vlgmr.msra.gmra.mrb[18].mxu0 %v1550_v58  ;;  %2795 = vset.pattern.permute.xlu1 %v2926_v12  ;;  %v1945_v12 = vld [vmem:[%s3651_s13 + $0xd0] sm:$0xff] }
 0x8fd   : > { %1659 = vmatprep.mubr.f32.mxu0 %v1553_v63 }
 0x900   : > { %1660 = vmatmul.mubr.f32.gmra.mrb[20].mxu0 %v1552_v3  ;;  %v1807_v3 = vld [vmem:[%s3649_s11 + $0x8] sm:$0xff] }
 0x901   : > { %1664 = vmatprep.mubr.f32.mxu0 %v1555_v4  ;;  %v1809_v4 = vld [vmem:[%s3649_s11 + $0x18] sm:$0xff] }
 0x902   : > { %v2691_v28 = vpack.c.bf16 %v1809_v4, %v1807_v3  ;;  %v1946_v3 = vld [vmem:[%s3651_s13 + $0xd8] sm:$0xff] }
 0x904   : > { %1665 = vmatmul.mubr.f32.gmra.mrb[22].mxu0 %v1554_v30  ;;  %v1806_v30 = vld [vmem:[%s3649_s11] sm:$0xff]  ;;  %2692 = vmatprep.subr.bf16.mxu1 %v2691_v28  ;;  %v2715_v28 = vpack.c.bf16 %v1946_v3, %v1945_v12 }
 0x9c9   : > { %v1441_v5 = vpop.f32.mrb[16].mxu0  ;;  %v3399_v54 = vpop.f32.mrb[12].mxu1 }
 0x9ca   : > { %v1442_v7 = vadd.f32 %v1441_v5, %v1328_v40  ;;  %v1443_v9 = vpop.f32.mrb[17].mxu0  ;;  %v3401_v11 = vpop.f32.mrb[13].mxu1  ;;  %v1808_v5 = vld [vmem:[%s3649_s11 + $0x10] sm:$0xff] }
 0x9cb   : > { %v1444_v51 = vadd.f32 %v1443_v9, %v1332_v41 }
 0x9cc   : > { %v1556_v10 = vmul.f32 %v1549_v56, %v1442_v7  ;;  %v2693_v7 = vpack.c.bf16 %v1808_v5, %v1806_v30  ;;  %v1929_v30 = vld [vmem:[%s3651_s13 + $0x50] sm:$0xff]  ;;  %v1930_v5 = vld [vmem:[%s3651_s13 + $0x58] sm:$0xff] }
 0x9cd   : > { %v1557_v8 = vmul.f32 %v1549_v56, %v1444_v51 }
 0x9cf   : > { %v2367_v61 = vpop.f32.mrb[18].mxu0  ;;  %1669 = vmatprep.mubr.f32.mxu0 %v1557_v8 }
 0x9d0   : > { %v2368_v13 = vpop.f32.mrb[19].mxu0  ;;  %1670 = vmatmul.mubr.f32.gmra.mrb[24].mxu0 %v1556_v10 }
 0x9d1   : > { %v2369_v59 = vadd.f32 %v2368_v13, %v2367_v61  ;;  %2492 = vmatprep.mubr.msk.f32.mxu0 %vm2920_vm0, %v2921_v1 }
 0x9d3   : > { %v2370_v16 = vpop.f32.mrb[20].mxu0  ;;  %v1675_v53 = vsel %vm924_vm4, %v2369_v59, -inf }
 0x9d4   : > { %v2371_v19 = vpop.f32.mrb[21].mxu0  ;;  %1676 = vmax.xlane.f32.xlu1 %v1675_v53  ;;  %v2928_v53 = vmov 3  }
 0x9d5   : > { %v2372_v23 = vadd.f32 %v2371_v19, %v2370_v16  ;;  %v2927_v16 = vmov 2   ;;  %v1935_v19 = vld [vmem:[%s3651_s13 + $0x80] sm:$0xff] }
 0x9d7   : > { %v2373_v25 = vpop.f32.mrb[22].mxu0  ;;  %v1678_v26 = vsel %vm924_vm4, %v2372_v23, -inf }
 0x9d8   : > { %v2374_v32 = vpop.f32.mrb[23].mxu0  ;;  %1679 = vmax.xlane.f32.xlu0 %v1678_v26  ;;  %1031 = vmax.xlane.f32.xlu1 %v1030_v27  ;;  %v1920_v26 = vld [vmem:[%s3651_s13 + $0x8] sm:$0xff]  ;;  %v1937_v27 = vld [vmem:[%s3651_s13 + $0x90] sm:$0xff] }
 0x9d9   : > { %v2375_v48 = vadd.f32 %v2374_v32, %v2373_v25  ;;  %v1938_v32 = vld [vmem:[%s3651_s13 + $0x98] sm:$0xff] }
 0x9da   : > { %v2699_v6 = vpack.c.bf16 %v1938_v32, %v1937_v27 }
 0x9db   : > { %v1681_v22 = vsel %vm924_vm4, %v2375_v48, -inf }
 0x9dc   : > { %1682 = vmax.xlane.f32.xlu0 %v1681_v22 }
 0xa61   : > { %v1677_v34 = vpop.xlane.xlu1 %1676 }
 0xa62   : > { %v1687_v35 = vsub.f32 %v2369_v59, %v1677_v34  ;;  %v1922_v34 = vld [vmem:[%s3651_s13 + $0x18] sm:$0xff] }
 0xa64   : > { %v1691_v36 = vmul.f32 1.442695, %v1687_v35 }
 0xa65   : > { %v1680_v37 = vpop.xlane.xlu0 %1679  ;;  %v1032_v17 = vpop.xlane.xlu1 %1031 }
 0xa66   : > { %2800 = vpow2.f32 %v1691_v36  ;;  %v1688_v38 = vsub.f32 %v2372_v23, %v1680_v37  ;;  %v1033_v49 = vsub.f32 %v1028_v20, %v1032_v17  ;;  %v1936_v20 = vld [vmem:[%s3651_s13 + $0x88] sm:$0xff]  ;;  %v1919_v23 = vld [vmem:[%s3651_s13] sm:$0xff]  ;;  %v1942_v17 = vld [vmem:[%s3651_s13 + $0xb8] sm:$0xff] }
 0xa67   : > { %v2695_v25 = vpack.c.bf16 %v1936_v20, %v1935_v19  ;;  %v2697_v22 = vpack.c.bf16 %v1920_v26, %v1919_v23  ;;  %v1939_v36 = vld [vmem:[%s3651_s13 + $0xa0] sm:$0xff]  ;;  %v1940_v37 = vld [vmem:[%s3651_s13 + $0xa8] sm:$0xff]  ;;  %v1934_v19 = vld [vmem:[%s3651_s13 + $0x78] sm:$0xff] }
 0xa68   : > { %v1693_v39 = vmul.f32 1.442695, %v1688_v38  ;;  %v1034_v18 = vmul.f32 1.442695, %v1033_v49  ;;  %v2701_v38 = vpack.c.bf16 %v1922_v34, %v1921_v33 }
 0xa69   : > { %v1683_v40 = vpop.xlane.xlu0 %1682 }
 0xa6a   : > { %2802 = vpow2.f32 %v1693_v39  ;;  %v1689_v41 = vsub.f32 %v2375_v48, %v1683_v40  ;;  %v2703_v40 = vpack.c.bf16 %v1940_v37, %v1939_v36 }
 0xa6c   : > { %v1695_v42 = vmul.f32 1.442695, %v1689_v41  ;;  %v1923_v41 = vld [vmem:[%s3651_s13 + $0x20] sm:$0xff] }
 0xa6e   : > { %2804 = vpow2.f32 %v1695_v42  ;;  %v1924_v42 = vld [vmem:[%s3651_s13 + $0x28] sm:$0xff] }
 0xa6f   : > { %2806 = vpow2.f32 %v1034_v18  ;;  %v1925_v18 = vld [vmem:[%s3651_s13 + $0x30] sm:$0xff] }
 0xa70   : > { %v3419_v43 = vpop.eup %2800 }
 0xa71   : > { %2478 = vmatprep.mubr.msk.f32.mxu1 %vm924_vm4, %v3419_v43 }
 0xa74   : > { %v3423_v45 = vpop.eup %2802 }
 0xa75   : > { %2479 = vmatmul.mubr.msk.f32.vlgmr.msra.gmra.mrb[14].mxu1 %vm924_vm4, %v3423_v45 }
 0xa76   : > { %2694 = vmatpush1.bf16.msra.mxu1 %v2693_v7  ;;  %v2717_v7 = vpack.c.bf16 %v1930_v5, %v1929_v30 }
 0xa77   : > { %2696 = vmatprep.subr.bf16.mxu1 %v2695_v25 }
 0xa78   : > { %v3427_v46 = vpop.eup %2804 }
 0xa79   : > { %2481 = vmatprep.mubr.msk.f32.mxu1 %vm924_vm4, %v3427_v46  ;;  %v2807_v58 = vpop.eup %2806 }
 0xa7a   : > { %v1036_v63 = vsel %vm1029_vm12, %v2807_v58, 0.0 }
 0xaa3   : > { %v2376_v50 = vpop.f32.mrb[24].mxu0 }
 0xaa4   : > { %v2377_v56 = vpop.f32.mrb[25].mxu0 }
 0xaa5   : > { %v2378_v57 = vadd.f32 %v2377_v56, %v2376_v50  ;;  %v1926_v50 = vld [vmem:[%s3651_s13 + $0x38] sm:$0xff]  ;;  %v1943_v56 = vld [vmem:[%s3651_s13 + $0xc0] sm:$0xff] }
 0xaa7   : > { %v1684_v47 = vsel %vm924_vm4, %v2378_v57, -inf }
 0xaa8   : > { %1685 = vmax.xlane.f32.xlu0 %v1684_v47  ;;  %v1944_v47 = vld [vmem:[%s3651_s13 + $0xc8] sm:$0xff] }
 0xaa9   : > { %v2711_v2 = vpack.c.bf16 %v1944_v47, %v1943_v56 }
 0xaac   : > { %1037 = vadd.xlane.f32.xlu0 %v1036_v63  ;;  %v1928_v63 = vld [vmem:[%s3651_s13 + $0x48] sm:$0xff] }
 0xb35   : > { %v1686_v9 = vpop.xlane.xlu0 %1685 }
 0xb36   : > { %v1690_v51 = vsub.f32 %v2378_v57, %v1686_v9  ;;  %v2709_v57 = vpack.c.bf16 %v1926_v50, %v1925_v18  ;;  %v1947_v9 = vld [vmem:[%s3651_s13 + $0xe0] sm:$0xff] }
 0xb38   : > { %v1697_v8 = vmul.f32 1.442695, %v1690_v51  ;;  %v1948_v51 = vld [vmem:[%s3651_s13 + $0xe8] sm:$0xff] }
 0xb39   : > { %v1038_v10 = vpop.xlane.xlu0 %1037 }
 0xb3a   : > { %2808 = vpow2.f32 %v1697_v8  ;;  %v2719_v8 = vpack.c.bf16 %v1948_v51, %v1947_v9 }
 0xb3b   : > { %2810 = vrcp.f32 %v1038_v10  ;;  %v1931_v10 = vld [vmem:[%s3651_s13 + $0x60] sm:$0xff] }
 0xb44   : > { %v3445_v61 = vpop.eup %2808 }
 0xb45   : > { %v2811_v13 = vpop.eup %2810  ;;  %2482 = vmatmul.mubr.msk.f32.gmra.mrb[16].mxu1 %vm924_vm4, %v3445_v61 }
 0xb46   : > { %v1040_v59 = vmul.f32 %v2811_v13, %v2807_v58  ;;  %1886 = vmatprep.mubr.f32.mxu1 %v2921_v1  ;;  %v1927_v58 = vld [vmem:[%s3651_s13 + $0x40] sm:$0xff]  ;;  %v1932_v13 = vld [vmem:[%s3651_s13 + $0x68] sm:$0xff] }
 0xb47   : > { %v2713_v4 = vpack.c.bf16 %v1928_v63, %v1927_v58 }
 0xb48   : > { %2044 = vperm.xlu0 %2796, %v1040_v59   ;;  %2038 = vperm.xlu1 %2795, %v1040_v59   ;;  %v2480_v14 = vpop.f32.mrb[14].mxu1 }
 0xb49   : > { %v1779_v15 = vpop.f32.mrb[15].mxu1 }
 0xb4a   : > { %2812 = vrcp.f32 %v1779_v15  ;;  %v1950_v15 = vld [vmem:[%s3651_s13 + $0xf8] sm:$0xff] }
 0xb4b   : > { %2814 = vrcp.f32 %v2480_v14  ;;  %v1949_v14 = vld [vmem:[%s3651_s13 + $0xf0] sm:$0xff] }
 0xb4c   : > { %2797 = vset.pattern.permute.xlu1 %v2927_v16  ;;  %2799 = vset.pattern.permute.xlu0 %v2928_v53  ;;  %v2723_v16 = vpack.c.bf16 %v1950_v15, %v1949_v14  ;;  %v2308_v15 = vld [vmem:[%s3653_s15] ss:$0 sm:$0xff] }
 0xb4d   : > { %2050 = vperm.xlu1 %2797, %v1040_v59  }
 0xb51   : > { %2798 = vset.pattern.permute.xlu1 %v2928_v53  ;;  %v1933_v53 = vld [vmem:[%s3651_s13 + $0x70] sm:$0xff] }
 0xb52   : > { %2056 = vperm.xlu1 %2798, %v1040_v59   ;;  %v2721_v59 = vpack.c.bf16 %v1932_v13, %v1931_v10  ;;  %v2725_v20 = vpack.c.bf16 %v1934_v19, %v1933_v53 }
 0xb54   : > { %v2813_v48 = vpop.eup %2812 }
 0xb55   : > { %v1802_v44 = vmul.f32 %v2813_v48, %v3419_v43  ;;  %v2815_v35 = vpop.eup %2814  ;;  %v2705_v43 = vpack.c.bf16 %v1924_v42, %v1923_v41  ;;  %v1513_v48 = vadd.f32 %v3231_v29, %v3219_v24 }
 0xb56   : > { %v1803_v39 = vmul.f32 %v2815_v35, %v3423_v45  ;;  %v1941_v45 = vld [vmem:[%s3651_s13 + $0xb0] sm:$0xff] }
 0xb57   : > { %2304 = vmatmul.mubr.msk.f32.vlgmr.msra.gmra.mrb[18].mxu1 %vm924_vm4, %v1802_v44  ;;  %v2707_v49 = vpack.c.bf16 %v1942_v17, %v1941_v45  ;;  %v1515_v44 = vadd.f32 %v3235_v31, %v3222_v21  ;;  %v2061_v31 = vld [vmem:[%s3652_s14] sm:$0xff]  ;;  %v1531_v45 = vadd.f32 %v3399_v54, %v3219_v24  ;;  %v1533_v17 = vadd.f32 %v3401_v11, %v3222_v21  ;;  %v2064_v11 = vld [vmem:[%s3652_s14 + $0x18] sm:$0xff] }
 0xb58   : > { %1892 = vmatprep.mubr.f32.mxu1 %v2921_v1  ;;  %2698 = vmatpush3.bf16.msra.mxu1 %v2697_v22 }
 0xb59   : > { %2700 = vmatprep.subr.bf16.mxu1 %v2699_v6 }
 0xb5b   : > { %2305 = vmatmul.mubr.msk.f32.gmra.mrb[20].mxu1 %vm924_vm4, %v1803_v39  ;;  %v1527_v39 = vadd.f32 %v3342_v62, %v3222_v21 }
 0xb5c   : > { %2702 = vmatpush3.bf16.msra.mxu1 %v2701_v38  ;;  %1898 = vmatprep.mubr.f32.mxu1 %v2921_v1  ;;  %v2062_v38 = vld [vmem:[%s3652_s14 + $0x8] sm:$0xff] }
 0xb5d   : > { %2704 = vmatprep.subr.bf16.mxu1 %v2703_v40 }
 0xb60   : > { %2706 = vmatpush3.bf16.msra.mxu1 %v2705_v43 }
 0xb61   : > { %2708 = vmatprep.subr.bf16.mxu1 %v2707_v49 }
 0xb64   : > { %2710 = vmatpush3.bf16.msra.mxu1 %v2709_v57 }
 0xb65   : > { %2712 = vmatprep.subr.bf16.mxu1 %v2711_v2 }
 0xb68   : > { %2714 = vmatpush3.bf16.msra.mxu1 %v2713_v4 }
 0xb69   : > { %2716 = vmatprep.subr.bf16.mxu1 %v2715_v28 }
 0xb6c   : > { %2718 = vmatpush3.bf16.msra.mxu1 %v2717_v7 }
 0xb6d   : > { %2720 = vmatprep.subr.bf16.mxu1 %v2719_v8 }
 0xb70   : > { %2722 = vmatpush3.bf16.msra.mxu1 %v2721_v59 }
 0xb71   : > { %2724 = vmatprep.subr.bf16.mxu1 %v2723_v16 }
 0xb74   : > { %2726 = vmatpush3.bf16.msra.mxu1 %v2725_v20 }
 0xbc7   : > { %v2045_v63 = vpop.permute.xlu0 %2044  ;;  %v2039_v2 = vpop.permute.xlu1 %2038 }
 0xbcc   : > { %v2051_v28 = vpop.permute.xlu1 %2050 }
 0xbd1   : > { %v2057_v13 = vpop.permute.xlu1 %2056 }
 0xc18   : > { %v2483_v23 = vpop.f32.mrb[16].mxu1 }
 0xc19   : > { %v1789_v25 = vpop.f32.mrb[17].mxu1 }
 0xc1a   : > { %2816 = vrcp.f32 %v1789_v25 }
 0xc1b   : > { %2818 = vrcp.f32 %v2483_v23 }
 0xc24   : > { %v2817_v26 = vpop.eup %2816 }
 0xc25   : > { %v1804_v27 = vmul.f32 %v2817_v26, %v3427_v46  ;;  %v2819_v32 = vpop.eup %2818  ;;  %v1519_v46 = vadd.f32 %v3251_v52, %v3219_v24  ;;  %v2728_v52 = vpack.c.bf16 %v2062_v38, %v2061_v31 }
 0xc26   : > { %v1805_v22 = vmul.f32 %v2819_v32, %v3445_v61 }
 0xc27   : > { %2306 = vmatmul.mubr.msk.f32.gmra.mrb[22].mxu1 %vm924_vm4, %v1804_v27  ;;  %2729 = vmatpush3.bf16.msra.mxu0 %v2728_v52 }
 0xc28   : > { %1904 = vmatprep.mubr.f32.mxu1 %v2921_v1  ;;  %v1521_v1 = vadd.f32 %v3255_v55, %v3222_v21  ;;  %2730 = vmatprep.subr.bf16.mxu0 %v2919_v0  ;;  %v1525_v55 = vadd.f32 %v3338_v60, %v3219_v24  ;;  %v2063_v21 = vld [vmem:[%s3652_s14 + $0x10] sm:$0xff] }
 0xc29   : > { %v2731_v3 = vpack.c.bf16 %v2064_v11, %v2063_v21 }
 0xc2a   : > { %v1888_v6 = vpop.f32.mrb[18].mxu1 }
 0xc2b   : > { %v1911_v33 = vmul.f32 %v1888_v6, %v1513_v48  ;;  %v1890_v34 = vpop.f32.mrb[19].mxu1  ;;  %2307 = vmatmul.mubr.msk.f32.gmra.mrb[24].mxu1 %vm924_vm4, %v1805_v22  ;;  %2732 = vmatpush3.bf16.msra.mxu0 %v2731_v3 }
 0xc2c   : > { %v1912_v35 = vmul.f32 %v1890_v34, %v1515_v44 }
 0xc2e   : > { %v1894_v36 = vpop.f32.mrb[20].mxu1  ;;  %2015 = vmatprep.mubr.f32.mxu1 %v1912_v35 }
 0xc2f   : > { %v1913_v29 = vmul.f32 %v1894_v36, %v1519_v46  ;;  %v1896_v37 = vpop.f32.mrb[21].mxu1  ;;  %2016 = vmatmul.mubr.f32.vlgmr.msra.gmra.mrb[26].mxu1 %v1911_v33 }
 0xc30   : > { %v1914_v61 = vmul.f32 %v1896_v37, %v1521_v1 }
 0xc32   : > { %2020 = vmatprep.mubr.f32.mxu1 %v1914_v61 }
 0xc33   : > { %2021 = vmatmul.mubr.f32.gmra.mrb[28].mxu1 %v1913_v29 }
 0xcfa   : > { %v1900_v40 = vpop.f32.mrb[22].mxu1 }
 0xcfb   : > { %v1915_v41 = vmul.f32 %v1900_v40, %v1525_v55  ;;  %v1902_v42 = vpop.f32.mrb[23].mxu1 }
 0xcfc   : > { %v1916_v43 = vmul.f32 %v1902_v42, %v1527_v39 }
 0xcfe   : > { %v1906_v49 = vpop.f32.mrb[24].mxu1  ;;  %2025 = vmatprep.mubr.f32.mxu1 %v1916_v43 }
 0xcff   : > { %v1917_v18 = vmul.f32 %v1906_v49, %v1531_v45  ;;  %v1908_v0 = vpop.f32.mrb[25].mxu1  ;;  %2026 = vmatmul.mubr.f32.gmra.mrb[30].mxu1 %v1915_v41 }
 0xd00   : > { %v1918_v50 = vmul.f32 %v1908_v0, %v1533_v17 }
 0xd02   : > { %v2417_v60 = vpop.f32.mrb[26].mxu1  ;;  %2030 = vmatprep.mubr.f32.mxu1 %v1918_v50 }
 0xd03   : > { %v2418_v56 = vpop.f32.mrb[27].mxu1  ;;  %2031 = vmatmul.mubr.f32.gmra.mrb[32].mxu1 %v1917_v18 }
 0xd04   : > { %v2419_v62 = vadd.f32 %v2418_v56, %v2417_v60 }
 0xd06   : > { %v2420_v57 = vpop.f32.mrb[28].mxu1  ;;  %v2041_v24 = vmul.f32 %v2419_v62, %v2039_v2 }
 0xd07   : > { %v2421_v47 = vpop.f32.mrb[29].mxu1 }
 0xd08   : > { %v2422_v58 = vadd.f32 %v2421_v47, %v2420_v57 }
 0xd0a   : > { %v2047_v54 = vmul.f32 %v2422_v58, %v2045_v63 }
 0xd0c   : > { %v2048_v12 = vadd.f32 %v2047_v54, %v2041_v24 }
 0xdd2   : > { %v2423_v4 = vpop.f32.mrb[30].mxu1 }
 0xdd3   : > { %v2424_v30 = vpop.f32.mrb[31].mxu1 }
 0xdd4   : > { %v2425_v5 = vadd.f32 %v2424_v30, %v2423_v4 }
 0xdd6   : > { %v2053_v7 = vmul.f32 %v2425_v5, %v2051_v28  ;;  %v2426_v9 = vpop.f32.mrb[32].mxu1 }
 0xdd7   : > { %v2427_v51 = vpop.f32.mrb[33].mxu1 }
 0xdd8   : > { %v2054_v8 = vadd.f32 %v2053_v7, %v2048_v12  ;;  %v2428_v10 = vadd.f32 %v2427_v51, %v2426_v9 }
 0xdda   : > { %v2059_v59 = vmul.f32 %v2428_v10, %v2057_v13 }
 0xddc   : > { %v2060_v14 = vadd.f32 %v2059_v59, %v2054_v8 }
 0xdde   : > { %2493 = vmatmul.mubr.msk.f32.vlgmr.msra.gmra.mrb[26].mxu0 %vm601_vm1, %v2060_v14 }
 0xeb1   : > { %v2141_v16 = vpop.f32.mrb[26].mxu0 }
 0xeb2   : > { %v2142_v53 = vadd.f32 %v2308_v15, %v2141_v16  ;;  %v2494_v19 = vpop.f32.mrb[27].mxu0 }
 0xeb4   : > { %2145 = vst.msk [vmem:[%s570_s28] sm:$0xff] %vm601_vm1, %v2142_v53 }
 0xeb5   : > { %2861 = shalt.err (!%p2858_p7)
}
 0xeb6   : > { %s2862_s18 = scalar_lea.hbm %s3595_s8, 128  ;;  %s2866_s19 = scalar_lea.hbm %s3654_s16, 256 }
 0xeb7   : > { %p2863_p8 = scmp.ne.s32.totalorder %s3595_s8, %s2862_s18  ;;  %p2867_p1 = scmp.lt.u32.totalorder %s3595_s8, %s3654_s16 }
 0xeb8   : > { %p2868_p0 = scmp.lt.u32.totalorder %s2866_s19, %s2862_s18  ;;  %p2870_p6 = scmp.lt.u32.totalorder %s2862_s18, %s3595_s8 }
 0xeb9   : > { %p2864_p11 = pnand %p2863_p8, %p3683_p9 }
 0xeba   : > { %p2869_p5 = por %p2868_p0, %p2867_p1 }
 0xebb   : > { %p2865_p13 = pneg %p2864_p11 }
 0xebc   : > { %p2871_p10 = por %p2870_p6, %p2869_p5 }
 0xebe   : > { %p2872_p12 = pnand %p2871_p10, %p2865_p13 }
 0xec0   : > { %2875 = shalt.err (!%p2872_p12)
}
 0xec1   : > { %2737 = dma.vmem_to_hbm [thread:$0]  (%p3683_p9), %s3597_s27, 128, %s3595_s8, %s2147_s17  }
 0xec2 PF: > { %s3684_s29 = sld [smem:[#allocation10_spill]]  ;;  %s3685_s30 = sld [smem:[#allocation8_spill]] }
 0xec3   : > { %s3686_s4 = sld [smem:[#allocation13_spill]] }
 0xec8   : > { %p2749_p2 = scmp.ge.s32.totalorder %s3684_s29, 2  ;;  %s2172_s25 = sand.u32 1, %s3685_s30  }
 0xec9   : > { %p3687_p3 = scmp.ne.s32.totalorder %s3686_s4, 0  ;;  %s2173_s24 = scalar_lea.sflag [#allocation4], %s2172_s25 }
 0xecb   : > { %p2744_p4 = pnand %p2749_p2, %p3687_p3 }
 0xecd   : > { %2897 = dma.done.wait (!%p2744_p4), %s2173_s24, 128  }
 0xece   : > { %2899 = vsyncadd (!%p2744_p4), %s2173_s24, 4294967168  ;;  %s3688_s24 = sld [smem:[#allocation11_spill]]  ;;  %s3689_s18 = sld [smem:[#allocation9_spill]] }
 0xecf   : > { %s3690_s23 = sld [smem:[#allocation12_spill]]  ;;  %s3691_s21 = smov %s2906_s22 }
 0xed4   : > { %p27_p7 = scmp.ge.s32.totalorder %s3688_s24, 4   ;;  %s3692_s22 = smov %s3689_s18 }
 0xed6   :  { %29 = sbr.rel (!%p27_p7) target bundleno = 8 (0x8), region = 133 }
 0xedd   :  { %2178 = vsyncpa [#allocation3], 1 }
 0xede   :  { %2180 = vsyncpa [#allocation3 + $0x1], 1 }
 0xedf   :  { %2181 = vsyncpa [#allocation4], 1 }
 0xee0   :  { %2183 = vsyncpa [#allocation4 + $0x1], 1 }

</bundles_post_ra>
